<compile_context>
chip_gen: v6e
topology: v6e:2x2x1
jax: 0.10.0
libtpu: 0.0.40
codegen_flags: <defaults>
</compile_context>

<pallas_src>
import functools
import math

import jax
import jax.numpy as jnp
from jax.experimental import pallas as pl
from jax.experimental.pallas import tpu as pltpu

LANE = 128


def _round_up(x, m):
    return (x + m - 1) // m * m


def _siren_fused_kernel(x_ref, w1_ref, wr_ref, b_ref, o_ref, *, depth, out_w,
                        use_bf16):
    # x_ref : (tm, pack*in_dim)       streamed packed coordinate tile
    # w1_ref: (pack*in_dim, fp)       block-diagonal first-layer weight (w0 folded)
    # wr_ref: (depth-1, fp, fp)       block-diagonal remaining weights
    # b_ref : (depth, 1, fp)          tiled biases (w0 folded into sin layers)
    # o_ref : (tm, out_w)             packed output tile, ONLY real columns
    def matmul(a, w):
        if use_bf16:
            a = a.astype(jnp.bfloat16)
            w = w.astype(jnp.bfloat16)
        return jnp.dot(a, w, preferred_element_type=jnp.float32)

    # Layer 0 (always followed by sin: depth >= 2).
    h = jnp.sin(matmul(x_ref[...], w1_ref[...]) + b_ref[0])
    # Layers 1 .. depth-1; sin on all but the last.
    for l in range(1, depth):
        h = matmul(h, wr_ref[l - 1]) + b_ref[l]
        if l != depth - 1:
            h = jnp.sin(h)
    o_ref[...] = h[:, :out_w].astype(o_ref.dtype)


def pack_siren_params(params, *, w0=30.0):
    """Fold w0 into sin layers and build block-diagonal, sample-packed weights.

    `params` is a list of (w, b) with w stored as (in_f, out_f) (i.e. x @ w + b).
    Packs `pack = LANE // max(in_dim, hidden, out_dim)` samples per lane-row:
    each weight becomes a block-diagonal matrix with `pack` copies of the
    per-sample weight; off-diagonal blocks are exactly zero so samples stay
    independent and zero padding propagates as zeros (sin(0) == 0).

    Returns (w_first, w_rest, b_all, pack, fp, out_dim).
    """
    depth = len(params)
    assert depth >= 2, "SIREN has at least a first and a last layer"
    in_dim = params[0][0].shape[0]
    hidden = params[0][0].shape[1]
    out_dim = params[-1][0].shape[1]

    slot = max(in_dim, hidden, out_dim)
    pack = max(1, LANE // slot)
    fp = _round_up(max(pack * hidden, pack * out_dim), LANE)

    # First layer (sin follows): fold w0.
    w0f, b0f = params[0]
    w0f = (w0 * w0f).astype(jnp.float32)
    b0f = (w0 * b0f).astype(jnp.float32)
    w_first = jnp.zeros((pack * in_dim, fp), jnp.float32)
    b_first = jnp.zeros((1, fp), jnp.float32)
    for k in range(pack):
        w_first = w_first.at[k * in_dim:(k + 1) * in_dim,
                             k * hidden:(k + 1) * hidden].set(w0f)
        b_first = b_first.at[0, k * hidden:(k + 1) * hidden].set(b0f)

    # Remaining layers.
    w_rest_list, b_rest_list = [], []
    for li in range(1, depth):
        w, b = params[li]
        is_last = li == depth - 1
        if not is_last:  # sin(w0*(x@w+b)) == sin(x@(w0*w) + w0*b)
            w = w0 * w
            b = w0 * b
        w = w.astype(jnp.float32)
        b = b.astype(jnp.float32)
        in_f, out_f = w.shape
        wp = jnp.zeros((fp, fp), jnp.float32)
        bp = jnp.zeros((1, fp), jnp.float32)
        for k in range(pack):
            wp = wp.at[k * in_f:(k + 1) * in_f,
                       k * out_f:(k + 1) * out_f].set(w)
            bp = bp.at[0, k * out_f:(k + 1) * out_f].set(b)
        w_rest_list.append(wp)
        b_rest_list.append(bp)

    w_rest = jnp.stack(w_rest_list, axis=0)              # (depth-1, fp, fp)
    b_all = jnp.stack([b_first] + b_rest_list, axis=0)   # (depth, 1, fp)
    return w_first, w_rest, b_all, pack, fp, out_dim


def siren_forward(x, params, *, w0=30.0, tm=8192, use_bf16_matmul=False):
    """Fused SIREN forward: one pallas_call, grid only over packed batch tiles."""
    x = x.astype(jnp.float32)
    n, in_dim = x.shape
    depth = len(params)

    w_first, w_rest, b_all, pack, fp, out_dim = pack_siren_params(params, w0=w0)
    xin_w = pack * in_dim
    out_w = pack * out_dim

    # Packed row count; tile it so that (a) tm is a multiple of 8 sublanes and
    # (b) the grid has >= 2 steps whenever possible (v7x megacore sharding).
    rows = -(-n // pack)
    rows8 = _round_up(rows, 8)
    tm = int(tm)
    if rows8 >= 16:
        tm = min(tm, _round_up(-(-rows8 // 2), 8))
    tm = max(8, min(tm, rows8))
    rows_pad = _round_up(rows8, tm)

    n_pad_samples = rows_pad * pack
    if n_pad_samples != n:
        x = jnp.pad(x, ((0, n_pad_samples - n), (0, 0)))
    x_packed = x.reshape(rows_pad, xin_w)

    kernel = functools.partial(
        _siren_fused_kernel, depth=depth, out_w=out_w, use_bf16=use_bf16_matmul)

    # Advisory cost for the XLA scheduler: transcendental-heavy custom call.
    flops = 2 * rows_pad * (xin_w * fp + (depth - 1) * fp * fp)
    transcendentals = rows_pad * fp * (depth - 1)
    bytes_accessed = 4 * (x_packed.size + rows_pad * out_w
                          + w_first.size + w_rest.size + b_all.size)
    cost = pl.CostEstimate(flops=flops, transcendentals=transcendentals,
                           bytes_accessed=bytes_accessed)

    out_packed = pl.pallas_call(
        kernel,
        out_shape=jax.ShapeDtypeStruct((rows_pad, out_w), jnp.float32),
        grid_spec=pltpu.PrefetchScalarGridSpec(
            num_scalar_prefetch=0,
            grid=(rows_pad // tm,),
            in_specs=[
                # streamed packed coordinates (last dim == full extent)
                pl.BlockSpec((tm, xin_w), lambda i: (i, 0)),
                # weights / biases: full arrays, resident in VMEM across the grid
                # TODO(synk): at production SIREN sizes mark these with
                # pipeline_mode=pl.Buffered(1) and store them bf16 to stay
                # inside v7x's 64 MiB VMEM; cosmetic at the current ~0.3 MB.
                pl.BlockSpec((w_first.shape[0], fp), lambda i: (0, 0)),
                pl.BlockSpec((depth - 1, fp, fp), lambda i: (0, 0, 0)),
                pl.BlockSpec((depth, 1, fp), lambda i: (0, 0, 0)),
            ],
            # Only the real (packed) output columns are written to HBM.
            out_specs=pl.BlockSpec((tm, out_w), lambda i: (i, 0)),
        ),
        compiler_params=pltpu.CompilerParams(
            dimension_semantics=("parallel",),
            vmem_limit_bytes=48 * 1024 * 1024,
        ),
        cost_estimate=cost,
    )(x_packed, w_first, w_rest, b_all)

    # Unpack: each packed row holds `pack` consecutive samples.
    return out_packed.reshape(rows_pad * pack, out_dim)[:n]


def init_siren_params(key, *, depth, hidden, in_dim, out_dim, w0=30.0):
    """Deterministic init matching SirenLayer.init_weights + PyTorch Linear bias."""
    dims = [in_dim] + [hidden] * (depth - 1) + [out_dim]
    params = []
    for li in range(depth):
        in_f, out_f = dims[li], dims[li + 1]
        is_first = li == 0
        key, kw, kb = jax.random.split(key, 3)
        wb = (1.0 / in_f) if is_first else (math.sqrt(6.0 / in_f) / w0)
        # stored as (in_f, out_f) == transposed PyTorch weight
        w = jax.random.uniform(kw, (in_f, out_f), jnp.float32, -wb, wb)
        bb = 1.0 / math.sqrt(in_f)  # PyTorch nn.Linear default bias init
        b = jax.random.uniform(kb, (out_f,), jnp.float32, -bb, bb)
        params.append((w, b))
    return params


def siren_ref(x, params, *, w0=30.0):
    h = x
    for li, (w, b) in enumerate(params):
        h = h @ w + b
        if li != len(params) - 1:
            h = jnp.sin(w0 * h)
    return h


if __name__ == "__main__":
    # params = {'network_depth': 4, 'network_width': 32,
    #           'network_input_size': 2, 'network_output_size': 3}
    depth, hidden, in_dim, out_dim = 4, 32, 2, 3
    w0 = 30.0
    n = 256  # number of input coordinates (batch)

    key = jax.random.PRNGKey(0)
    key, kx = jax.random.split(key)
    x = jax.random.uniform(kx, (n, in_dim), jnp.float32, -1.0, 1.0)

    params = init_siren_params(
        key, depth=depth, hidden=hidden, in_dim=in_dim, out_dim=out_dim, w0=w0
    )

    out = siren_forward(x, params, w0=w0)
    out = jax.block_until_ready(out)

    ref = siren_ref(x, params, w0=w0)
    assert out.shape == (n, out_dim)
    assert jnp.allclose(out, ref, atol=1e-4, rtol=1e-4), "mismatch vs reference"
    print("KERNEL_OK")
</pallas_src>

<mosaic_0001>
module attributes {stable_mosaic.version = 11 : i64} {
  func.func @_siren_fused_kernel(%arg0: i32, %arg1: memref<32x8xf32, #tpu.memory_space<vmem>>, %arg2: memref<8x128xf32, #tpu.memory_space<vmem>>, %arg3: memref<3x128x128xf32, #tpu.memory_space<vmem>>, %arg4: memref<4x1x128xf32, #tpu.memory_space<vmem>>, %arg5: memref<32x12xf32, #tpu.memory_space<vmem>>) attributes {dimension_semantics = [#tpu.dimension_semantics<parallel>], iteration_bounds = array<i64: 2>, scalar_prefetch = 0 : i64, scratch_operands = 0 : i64, tpu.core_type = #tpu.core_type<tc>, window_params = [{transform_indices = @transform_0, window_bounds = array<i64: 32, 8>}, {pipeline_mode = #tpu.pipeline_mode<synchronous>, transform_indices = @transform_1, window_bounds = array<i64: 8, 128>}, {pipeline_mode = #tpu.pipeline_mode<synchronous>, transform_indices = @transform_2, window_bounds = array<i64: 3, 128, 128>}, {pipeline_mode = #tpu.pipeline_mode<synchronous>, transform_indices = @transform_3, window_bounds = array<i64: 4, 1, 128>}, {transform_indices = @transform_4, window_bounds = array<i64: 32, 12>}]} {
    %c0 = arith.constant 0 : index
    %c0_0 = arith.constant 0 : index
    %0 = vector.load %arg1[%c0, %c0_0] : memref<32x8xf32, #tpu.memory_space<vmem>>, vector<32x8xf32>
    %c0_1 = arith.constant 0 : index
    %c0_2 = arith.constant 0 : index
    %1 = vector.load %arg2[%c0_1, %c0_2] : memref<8x128xf32, #tpu.memory_space<vmem>>, vector<8x128xf32>
    %cst = arith.constant dense<0.000000e+00> : vector<32x128xf32>
    %2 = tpu.matmul %0, %1, %cst {dimension_numbers = #tpu.dot_dimension_numbers<[1], [0], [0], [1], [0, 0, 1, 1], [], []>} : vector<32x8xf32>, vector<8x128xf32>, vector<32x128xf32> -> vector<32x128xf32>
    %c0_3 = arith.constant 0 : index
    %c0_4 = arith.constant 0 : index
    %c0_5 = arith.constant 0 : index
    %3 = vector.load %arg4[%c0_3, %c0_4, %c0_5] : memref<4x1x128xf32, #tpu.memory_space<vmem>>, vector<1x1x128xf32>
    %4 = vector.shape_cast %3 : vector<1x1x128xf32> to vector<1x128xf32>
    %5 = vector.broadcast %4 : vector<1x128xf32> to vector<32x128xf32>
    %6 = arith.addf %2, %5 : vector<32x128xf32>
    %7 = math.sin %6 : vector<32x128xf32>
    %c0_6 = arith.constant 0 : index
    %c0_7 = arith.constant 0 : index
    %c0_8 = arith.constant 0 : index
    %8 = vector.load %arg3[%c0_6, %c0_7, %c0_8] : memref<3x128x128xf32, #tpu.memory_space<vmem>>, vector<1x128x128xf32>
    %9 = vector.shape_cast %8 : vector<1x128x128xf32> to vector<128x128xf32>
    %cst_9 = arith.constant dense<0.000000e+00> : vector<32x128xf32>
    %10 = tpu.matmul %7, %9, %cst_9 {dimension_numbers = #tpu.dot_dimension_numbers<[1], [0], [0], [1], [0, 0, 1, 1], [], []>} : vector<32x128xf32>, vector<128x128xf32>, vector<32x128xf32> -> vector<32x128xf32>
    %c1 = arith.constant 1 : index
    %c0_10 = arith.constant 0 : index
    %c0_11 = arith.constant 0 : index
    %11 = vector.load %arg4[%c1, %c0_10, %c0_11] : memref<4x1x128xf32, #tpu.memory_space<vmem>>, vector<1x1x128xf32>
    %12 = vector.shape_cast %11 : vector<1x1x128xf32> to vector<1x128xf32>
    %13 = vector.broadcast %12 : vector<1x128xf32> to vector<32x128xf32>
    %14 = arith.addf %10, %13 : vector<32x128xf32>
    %15 = math.sin %14 : vector<32x128xf32>
    %c1_12 = arith.constant 1 : index
    %c0_13 = arith.constant 0 : index
    %c0_14 = arith.constant 0 : index
    %16 = vector.load %arg3[%c1_12, %c0_13, %c0_14] : memref<3x128x128xf32, #tpu.memory_space<vmem>>, vector<1x128x128xf32>
    %17 = vector.shape_cast %16 : vector<1x128x128xf32> to vector<128x128xf32>
    %cst_15 = arith.constant dense<0.000000e+00> : vector<32x128xf32>
    %18 = tpu.matmul %15, %17, %cst_15 {dimension_numbers = #tpu.dot_dimension_numbers<[1], [0], [0], [1], [0, 0, 1, 1], [], []>} : vector<32x128xf32>, vector<128x128xf32>, vector<32x128xf32> -> vector<32x128xf32>
    %c2 = arith.constant 2 : index
    %c0_16 = arith.constant 0 : index
    %c0_17 = arith.constant 0 : index
    %19 = vector.load %arg4[%c2, %c0_16, %c0_17] : memref<4x1x128xf32, #tpu.memory_space<vmem>>, vector<1x1x128xf32>
    %20 = vector.shape_cast %19 : vector<1x1x128xf32> to vector<1x128xf32>
    %21 = vector.broadcast %20 : vector<1x128xf32> to vector<32x128xf32>
    %22 = arith.addf %18, %21 : vector<32x128xf32>
    %23 = math.sin %22 : vector<32x128xf32>
    %c2_18 = arith.constant 2 : index
    %c0_19 = arith.constant 0 : index
    %c0_20 = arith.constant 0 : index
    %24 = vector.load %arg3[%c2_18, %c0_19, %c0_20] : memref<3x128x128xf32, #tpu.memory_space<vmem>>, vector<1x128x128xf32>
    %25 = vector.shape_cast %24 : vector<1x128x128xf32> to vector<128x128xf32>
    %cst_21 = arith.constant dense<0.000000e+00> : vector<32x128xf32>
    %26 = tpu.matmul %23, %25, %cst_21 {dimension_numbers = #tpu.dot_dimension_numbers<[1], [0], [0], [1], [0, 0, 1, 1], [], []>} : vector<32x128xf32>, vector<128x128xf32>, vector<32x128xf32> -> vector<32x128xf32>
    %c3 = arith.constant 3 : index
    %c0_22 = arith.constant 0 : index
    %c0_23 = arith.constant 0 : index
    %27 = vector.load %arg4[%c3, %c0_22, %c0_23] : memref<4x1x128xf32, #tpu.memory_space<vmem>>, vector<1x1x128xf32>
    %28 = vector.shape_cast %27 : vector<1x1x128xf32> to vector<1x128xf32>
    %29 = vector.broadcast %28 : vector<1x128xf32> to vector<32x128xf32>
    %30 = arith.addf %26, %29 : vector<32x128xf32>
    %31 = vector.extract_strided_slice %30 {offsets = [0, 0], sizes = [32, 12], strides = [1, 1]} : vector<32x128xf32> to vector<32x12xf32>
    %c0_24 = arith.constant 0 : index
    %c0_25 = arith.constant 0 : index
    %32 = vector.load %arg5[%c0_24, %c0_25] : memref<32x12xf32, #tpu.memory_space<vmem>>, vector<32x12xf32>
    tpu.vector_store %arg5[%c0_24, %c0_25], %31 {strides = array<i32>} : memref<32x12xf32, #tpu.memory_space<vmem>>, vector<32x12xf32>,
    return
  }
  func.func @transform_0(%arg0: i32) -> (i32, i32) {
    %c0_i32 = arith.constant 0 : i32
    %c0_i32_0 = arith.constant 0 : i32
    return %arg0, %c0_i32 : i32, i32
  }
  func.func @transform_1(%arg0: i32) -> (i32, i32) {
    %c0_i32 = arith.constant 0 : i32
    %c0_i32_0 = arith.constant 0 : i32
    %c0_i32_1 = arith.constant 0 : i32
    return %c0_i32, %c0_i32_0 : i32, i32
  }
  func.func @transform_2(%arg0: i32) -> (i32, i32, i32) {
    %c0_i32 = arith.constant 0 : i32
    %c0_i32_0 = arith.constant 0 : i32
    %c0_i32_1 = arith.constant 0 : i32
    %c0_i32_2 = arith.constant 0 : i32
    return %c0_i32, %c0_i32_0, %c0_i32_1 : i32, i32, i32
  }
  func.func @transform_3(%arg0: i32) -> (i32, i32, i32) {
    %c0_i32 = arith.constant 0 : i32
    %c0_i32_0 = arith.constant 0 : i32
    %c0_i32_1 = arith.constant 0 : i32
    %c0_i32_2 = arith.constant 0 : i32
    return %c0_i32, %c0_i32_0, %c0_i32_1 : i32, i32, i32
  }
  func.func @transform_4(%arg0: i32) -> (i32, i32) {
    %c0_i32 = arith.constant 0 : i32
    %c0_i32_0 = arith.constant 0 : i32
    return %arg0, %c0_i32 : i32, i32
  }
}

</mosaic_0001>

<bundles_post_ra>
// kernel: tpu_custom_call.1
= control target key start
LH: loop header
LB: loop body
LE: loop exit
PB: predicated region body
PF: predicated region fallthrough
CT: control target
= control target key end

     0   :  { %9 = vsyncpa [#allocation3], 0  ;;  %s2462_s15 = smov 0   ;;  %s3382_s0 = inlined_call_operand.vmem [shape: f32[64,8], index: 0, kind: input, shape index: {}]   ;;  %s3383_s1 = inlined_call_operand.vmem [shape: f32[8,128], index: 1, kind: input, shape index: {}]   ;;  %s3384_s2 = inlined_call_operand.hbm [shape: f32[3,128,128], index: 2, kind: input, shape index: {}]   ;;  %s3385_s3 = inlined_call_operand.vmem [shape: f32[4,1,128], index: 3, kind: input, shape index: {}]   ;;  %s3386_s4 = inlined_call_operand.vmem [shape: f32[64,12], index: 4, kind: output, shape index: {}]  }
   0x1 LB: > { %s1976_s16 = sadd.s32 4294967295, %s2426_s15   ;;  %p1978_p0 = scmp.ge.s32.totalorder %s2426_s15, 1  ;;  %s2426_s15 = sphi %s2462_s15, %s15_s15  }
   0x2   : > { %p135_p1 = scmp.lt.s32.totalorder %s2426_s15, 3  ;;  %s2428_s17 = smov [#allocation2]  }
   0x3   : > { %s150_s18 = sshll.u32 %s2428_s17, 4  ;;  %p2474_p3 = scmp.eq.s32.totalorder %s1976_s16, 0  ;;  %s151_s18 = int_to_ptr.vmem [resolvable:$true] %s150_s18 }
   0x4   : > { %p2470_p2 = pnand %p1978_p0, %p135_p1  ;;  %s2401_s21 = scalar_lea.vmem %s151_s18, 6144 }
   0x5   : > { %p2402_p7 = scmp.ne.s32.totalorder %s151_s18, %s2401_s21  ;;  %p2409_p10 = scmp.lt.s32.totalorder %s151_s18, %s151_s18 }
   0x6   : > { %p2319_p4 = pneg %p2470_p2  ;;  %p2410_p11 = scmp.lt.s32.totalorder %s2401_s21, %s2401_s21 }
   0x8   : > { %p2320_p5 = pnand %p2474_p3, %p2319_p4  ;;  %p2411_p12 = por %p2410_p11, %p2409_p10 }
   0xa   : > { %p2392_p6 = pneg %p2320_p5 }
   0xc   : > { %p2404_p8 = pnand %p2402_p7, %p2392_p6 }
   0xe   : > { %p2405_p9 = pneg %p2404_p8 }
  0x10   : > { %p2412_p13 = pnand %p2411_p12, %p2405_p9 }
  0x12   : > { %2415 = shalt.err (!%p2412_p13)
}
  0x13   : > { %s2429_s22 = smov 128   ;;  %s2430_s23 = smov 8  }
  0x14   : > { %2322 = dma.hbm_to_vmem [thread:$0]  (!%p2320_p5), %s3384_s2, 6144, %s151_s18, [#allocation3], %s2429_s22, %s2429_s22, %s2430_s23  }
  0x15   : > { %178 = sbr.rel (%p2470_p2) target bundleno = 1178 (0x49a), region = 36 }
  0x1a   : > { %2421 = dma.done.wait (%p2474_p3), [#allocation3], 6144  }
  0x1b   : > { %2423 = vsyncadd (%p2474_p3), [#allocation3], 4294961152  ;;  %s1983_s26 = sshll.u32 %s1976_s16, 2  ;;  %vm228_vm0 = vcmask 64512   ;;  %v220_v0 = vld [vmem:[%s3383_s1] sm:$0xff]  ;;  %v757_v5 = vld [vmem:[#allocation2 + $0x78] sm:$0xff] }
  0x1c   : > { %p205_p0 = scmp.lt.s32.totalorder %s1983_s26, 7  ;;  %2113 = vmatprep.subr.mxu0 %v220_v0  ;;  %2121 = vmatprep.subr.mxu1 %v757_v5  ;;  %v756_v6 = vld [vmem:[#allocation2 + $0x70] sm:$0xff]  ;;  %v755_v7 = vld [vmem:[#allocation2 + $0x68] sm:$0xff]  ;;  %v754_v8 = vld [vmem:[#allocation2 + $0x60] sm:$0xff]  ;;  %v2431_v55 = vmov 683565275  }
  0x1d   : > { %2114 = vmatpush3.msra.mxu0 %v220_v0  ;;  %2122 = vmatpush3.msra.mxu1 %v757_v5  ;;  %v753_v9 = vld [vmem:[#allocation2 + $0x58] sm:$0xff]  ;;  %v752_v10 = vld [vmem:[#allocation2 + $0x50] sm:$0xff]  ;;  %v751_v11 = vld [vmem:[#allocation2 + $0x48] sm:$0xff]  ;;  %v2432_v57 = vmov 2475754826  }
  0x1e   : > { %s3410_s26 = smov (!%p205_p0, %s1983_s26), 7  ;;  %2123 = vmatprep.subr.mxu1 %v756_v6  ;;  %v750_v12 = vld [vmem:[#allocation2 + $0x40] sm:$0xff]  ;;  %v749_v13 = vld [vmem:[#allocation2 + $0x38] sm:$0xff]  ;;  %v748_v14 = vld [vmem:[#allocation2 + $0x30] sm:$0xff]  ;;  %v2433_v61 = vmov 2131351028  }
  0x1f   : > { %s1984_s27 = sshll.u32 %s3410_s26, 3  ;;  %2124 = vmatpush3.msra.mxu1 %v756_v6  ;;  %v747_v15 = vld [vmem:[#allocation2 + $0x28] sm:$0xff]  ;;  %v746_v16 = vld [vmem:[#allocation2 + $0x20] sm:$0xff]  ;;  %v745_v17 = vld [vmem:[#allocation2 + $0x18] sm:$0xff]  ;;  %v2434_v0 = vmov 2102212464  }
  0x20   : > { %s208_s30 = scalar_lea.vmem %s3382_s0, %s1984_s27  ;;  %2125 = vmatprep.subr.mxu1 %v755_v7  ;;  %v744_v18 = vld [vmem:[#allocation2 + $0x10] sm:$0xff]  ;;  %v743_v19 = vld [vmem:[#allocation2 + $0x8] sm:$0xff]  ;;  %v742_v20 = vld [vmem:[#allocation2] sm:$0xff]  ;;  %v2436_v6 = vmov 1326507024   ;;  %s214_s18 = scalar_lea.vmem %s3386_s4, %s1984_s27 }
  0x21   : > { %v216_v1 = vld [vmem:[%s208_s30] sm:$0xff]  ;;  %v217_v2 = vld [vmem:[%s208_s30 + $0x8] sm:$0xff]  ;;  %v218_v3 = vld [vmem:[%s208_s30 + $0x10] sm:$0xff]  ;;  %2126 = vmatpush3.msra.mxu1 %v755_v7 }
  0x22   : > { %2115 = vmatprep.mubr.msk.f32.mxu0 %vm228_vm0, %v216_v1  ;;  %v219_v4 = vld [vmem:[%s208_s30 + $0x18] sm:$0xff]  ;;  %2127 = vmatprep.subr.mxu1 %v754_v8  ;;  %v1987_v21 = vld [vmem:[%s3385_s3] ss:$0 sm:$0xff] }
  0x23   : > { %2116 = vmatmul.mubr.msk.f32.vlgmr.msra.gmra.mxu0 %vm228_vm0, %v217_v2  ;;  %2128 = vmatpush3.msra.mxu1 %v754_v8 }
  0x24   : > { %2118 = vmatprep.mubr.msk.f32.mxu0 %vm228_vm0, %v218_v3  ;;  %2129 = vmatprep.subr.mxu1 %v753_v9  ;;  %v2435_v3 = vmov 920167782  }
  0x25   : > { %2130 = vmatpush3.msra.mxu1 %v753_v9 }
  0x26   : > { %2131 = vmatprep.subr.mxu1 %v752_v10 }
  0x27   : > { %2119 = vmatmul.mubr.msk.f32.gmra.mxu0 %vm228_vm0, %v219_v4  ;;  %2132 = vmatpush3.msra.mxu1 %v752_v10 }
  0x28   : > { %2133 = vmatprep.subr.mxu1 %v751_v11 }
  0x29   : > { %2134 = vmatpush3.msra.mxu1 %v751_v11 }
  0x2a   : > { %2135 = vmatprep.subr.mxu1 %v750_v12 }
  0x2b   : > { %2136 = vmatpush3.msra.mxu1 %v750_v12 }
  0x2c   : > { %2137 = vmatprep.subr.mxu1 %v749_v13 }
  0x2d   : > { %2138 = vmatpush3.msra.mxu1 %v749_v13 }
  0x2e   : > { %2139 = vmatprep.subr.mxu1 %v748_v14 }
  0x2f   : > { %2140 = vmatpush3.msra.mxu1 %v748_v14 }
  0x30   : > { %2141 = vmatprep.subr.mxu1 %v747_v15 }
  0x31   : > { %2142 = vmatpush3.msra.mxu1 %v747_v15 }
  0x32   : > { %2143 = vmatprep.subr.mxu1 %v746_v16 }
  0x33   : > { %2144 = vmatpush3.msra.mxu1 %v746_v16 }
  0x34   : > { %2145 = vmatprep.subr.mxu1 %v745_v17 }
  0x35   : > { %2146 = vmatpush3.msra.mxu1 %v745_v17 }
  0x36   : > { %2147 = vmatprep.subr.mxu1 %v744_v18 }
  0x37   : > { %2148 = vmatpush3.msra.mxu1 %v744_v18 }
  0x38   : > { %2149 = vmatprep.subr.mxu1 %v743_v19 }
  0x39   : > { %2150 = vmatpush3.msra.mxu1 %v743_v19 }
  0x3a   : > { %2151 = vmatprep.subr.mxu1 %v742_v20 }
  0x3b   : > { %2152 = vmatpush3.msra.mxu1 %v742_v20 }
  0xe3   : > { %v2117_v22 = vpop.f32.mrf.mxu0 }
  0xe4   : > { %v2505_v23 = vadd.f32 %v2117_v22, %v1987_v21 }
  0xe5   : > { %v307_v24 = vpop.f32.mrf.mxu0 }
  0xe6   : > { %v430_v25 = vand.u32 2147483647, %v2505_v23  ;;  %v433_v26 = vand.u32 2139095040, %v2505_v23  ;;  %v2509_v27 = vadd.f32 %v1987_v21, %v307_v24 }
  0xe7   : > { %v2120_v28 = vpop.f32.mrf.mxu0 }
  0xe8   : > { %v434_v29 = vshrl.u32 %v433_v26, 23  ;;  %v329_v30 = vand.u32 2139095040, %v2509_v27  ;;  %v2512_v31 = vadd.f32 %v2120_v28, %v1987_v21  ;;  %v437_v32 = vand.u32 8388607, %v430_v25 }
  0xe9   : > { %v317_v33 = vpop.f32.mrf.mxu0 }
  0xea   : > { %v1996_v34 = vadd.s32 4294967169, %v434_v29  ;;  %v330_v35 = vshrl.u32 %v329_v30, 23  ;;  %v638_v36 = vand.u32 2147483647, %v2512_v31  ;;  %v641_v37 = vand.u32 2139095040, %v2512_v31 }
  0xeb   : > { %v2518_v38 = vadd.f32 %v1987_v21, %v317_v33  ;;  %v438_v41 = vor.u32 8388608, %v437_v32 }
  0xec   : > { %v440_v39 = vadd.s32 1, %v1996_v34  ;;  %v1992_v40 = vadd.s32 4294967169, %v330_v35  ;;  %v642_v42 = vshrl.u32 %v641_v37, 23  ;;  %v2522_v43 = vand.u32 8388607, %v638_v36 }
  0xed   : > { %v537_v44 = vand.u32 2139095040, %v2518_v38  ;;  %v2525_v49 = vshll.u32 %v438_v41, 8  ;;  %v534_v50 = vand.u32 2147483647, %v2518_v38 }
  0xee   : > { %vm441_vm1 = vcmp.gt.s32.totalorder %v440_v39, 0  ;;  %v336_v46 = vadd.s32 1, %v1992_v40  ;;  %v2004_v47 = vadd.s32 4294967169, %v642_v42  ;;  %v646_v53 = vor.u32 8388608, %v2522_v43 }
  0xef   : > { %v442_v45 = vsel %vm441_vm1, %v440_v39, 0  ;;  %v538_v54 = vshrl.u32 %v537_v44, 23  ;;  %v2559_v43 = vand.u32 8388607, %v534_v50 }
  0xf0   : > { %v444_v48 = vand.u32 31, %v442_v45  ;;  %v443_v51 = vshrl.u32 %v442_v45, 5  ;;  %vm337_vm2 = vcmp.gt.s32.totalorder %v336_v46, 0  ;;  %v648_v59 = vadd.s32 1, %v2004_v47 }
  0xf1   : > { %v2000_v11 = vadd.s32 4294967169, %v538_v54  ;;  %v2541_v29 = vsel %vm337_vm2, %v336_v46, 0  ;;  %v2555_v42 = vshll.u32 %v646_v53, 8 }
  0xf2   : > { %v445_v52 = vsub.s32 32, %v444_v48  ;;  %v447_v56 = vshll.u32 %v2431_v55, %v444_v48  ;;  %v450_v58 = vshll.u32 %v2432_v57, %v444_v48  ;;  %v453_v63 = vshll.u32 %v2433_v61, %v444_v48 }
  0xf3   : > { %v456_v2 = vshll.u32 %v2434_v0, %v444_v48  ;;  %v459_v5 = vshll.u32 %v2435_v3, %v444_v48  ;;  %vm462_vm3 = vcmp.lt.s32.totalorder %v443_v51, 1  ;;  %vm465_vm4 = vcmp.lt.s32.totalorder %v443_v51, 4 }
  0xf4   : > { %v448_v60 = vshrl.u32 %v2432_v57, %v445_v52  ;;  %v451_v62 = vshrl.u32 %v2433_v61, %v445_v52  ;;  %v454_v1 = vshrl.u32 %v2434_v0, %v445_v52  ;;  %v457_v4 = vshrl.u32 %v2435_v3, %v445_v52 }
  0xf5   : > { %v460_v7 = vshrl.u32 %v2436_v6, %v445_v52  ;;  %v446_v14 = vshrl.u32 %v2431_v55, %v445_v52  ;;  %vm463_vm5 = vcmp.lt.s32.totalorder %v443_v51, 2  ;;  %vm464_vm6 = vcmp.lt.s32.totalorder %v443_v51, 3 }
  0xf6   : > { %v449_v8 = vor.u32 %v448_v60, %v447_v56  ;;  %v452_v9 = vor.u32 %v451_v62, %v450_v58  ;;  %v455_v10 = vor.u32 %v454_v1, %v453_v63  ;;  %v458_v12 = vor.u32 %v457_v4, %v456_v2 }
  0xf7   : > { %v461_v13 = vor.u32 %v460_v7, %v459_v5  ;;  %vm649_vm7 = vcmp.gt.s32.totalorder %v648_v59, 0  ;;  %v544_v39 = vadd.s32 1, %v2000_v11  ;;  %v2553_v40 = vand.u32 31, %v2541_v29 }
  0xf8   : > { %v467_v15 = vsel %vm465_vm4, %v455_v10, 2102212464  ;;  %v470_v16 = vsel %vm462_vm3, %v449_v8, %v452_v9  ;;  %v474_v17 = vsel %vm462_vm3, %v452_v9, %v455_v10  ;;  %v471_v18 = vsel %vm465_vm4, %v458_v12, 920167782 }
  0xf9   : > { %v475_v19 = vsel %vm465_vm4, %v461_v13, 1326507024  ;;  %v466_v20 = vsel %vm462_vm3, %v446_v14, %v449_v8  ;;  %v468_v21 = vsel %vm464_vm6, %v452_v9, %v467_v15  ;;  %v472_v22 = vsel %vm464_vm6, %v455_v10, %v471_v18 }
  0xfa   : > { %v476_v24 = vsel %vm464_vm6, %v458_v12, %v475_v19  ;;  %v473_v26 = vsel %vm463_vm5, %v470_v16, %v472_v22  ;;  %v469_v35 = vsel %vm463_vm5, %v466_v20, %v468_v21  ;;  %v650_v37 = vsel %vm649_vm7, %v648_v59, 0 }
  0xfb   : > { %v477_v28 = vsel %vm463_vm5, %v474_v17, %v476_v24  ;;  %v2548_v33 = vmul.u32.u64.low %v2525_v49, %v473_v26  ;;  %v2549_v34 = vmul.u32.u64.high %v2525_v49, %v473_v26, %v2548_v33  ;;  %v652_v41 = vand.u32 31, %v650_v37 }
  0xfc   : > { %v2544_v30 = vmul.u32.u64.low %v2525_v49, %v477_v28  ;;  %v2545_v32 = vmul.u32.u64.high %v2525_v49, %v477_v28, %v2544_v30  ;;  %v485_v44 = vmul.u32 %v2525_v49, %v469_v35  ;;  %v651_v46 = vshrl.u32 %v650_v37, 5 }
  0xfd   : > { %v488_v45 = vadd.s32 1, %v2549_v34  ;;  %v653_v47 = vsub.s32 32, %v652_v41  ;;  %v655_v48 = vshll.u32 %v2431_v55, %v652_v41  ;;  %v658_v51 = vshll.u32 %v2432_v57, %v652_v41 }
  0xfe   : > { %vm487_vm8 = vc.u32 %v2545_v32, %v2548_v33  ;;  %vm545_vm9 = vcmp.gt.s32.totalorder %v544_v39, 0  ;;  %v661_v53 = vshll.u32 %v2433_v61, %v652_v41  ;;  %v664_v54 = vshll.u32 %v2434_v0, %v652_v41 }
  0xff   : > { %v489_v52 = vsel %vm487_vm8, %v488_v45, %v2549_v34  ;;  %v667_v49 = vshll.u32 %v2435_v3, %v652_v41  ;;  %v654_v58 = vshrl.u32 %v2431_v55, %v653_v47  ;;  %v656_v59 = vshrl.u32 %v2432_v57, %v653_v47 }
 0x100   : > { %v490_v56 = vadd.s32 %v489_v52, %v485_v44  ;;  %v659_v60 = vshrl.u32 %v2433_v61, %v653_v47  ;;  %v662_v62 = vshrl.u32 %v2434_v0, %v653_v47  ;;  %v665_v63 = vshrl.u32 %v2435_v3, %v653_v47 }
 0x101   : > { %v668_v1 = vshrl.u32 %v2436_v6, %v653_v47  ;;  %vm670_vm10 = vcmp.lt.s32.totalorder %v651_v46, 1  ;;  %v657_v4 = vor.u32 %v656_v59, %v655_v48  ;;  %vm671_vm11 = vcmp.lt.s32.totalorder %v651_v46, 2 }
 0x102   : > { %v491_v2 = vadd.s32 536870912, %v490_v56  ;;  %v660_v5 = vor.u32 %v659_v60, %v658_v51  ;;  %v663_v7 = vor.u32 %v662_v62, %v661_v53  ;;  %v666_v8 = vor.u32 %v665_v63, %v664_v54 }
 0x103   : > { %v669_v9 = vor.u32 %v668_v1, %v667_v49  ;;  %vm672_vm12 = vcmp.lt.s32.totalorder %v651_v46, 3  ;;  %vm673_vm13 = vcmp.lt.s32.totalorder %v651_v46, 4  ;;  %v674_v11 = vsel %vm670_vm10, %v654_v58, %v657_v4 }
 0x104   : > { %v2577_v10 = vshrl.u32 %v491_v2, 30  ;;  %v678_v12 = vsel %vm670_vm10, %v657_v4, %v660_v5  ;;  %v675_v13 = vsel %vm673_vm13, %v663_v7, 2102212464  ;;  %v679_v14 = vsel %vm673_vm13, %v666_v8, 920167782 }
 0x105   : > { %v682_v15 = vsel %vm670_vm10, %v660_v5, %v663_v7  ;;  %v683_v16 = vsel %vm673_vm13, %v669_v9, 1326507024  ;;  %v676_v18 = vsel %vm672_vm12, %v660_v5, %v675_v13  ;;  %v680_v19 = vsel %vm672_vm12, %v663_v7, %v679_v14 }
 0x106   : > { %v493_v17 = vshll.u32 %v2577_v10, 30  ;;  %v684_v20 = vsel %vm672_vm12, %v666_v8, %v683_v16  ;;  %v2581_v21 = vsub.s32 32, %v2553_v40  ;;  %v681_v22 = vsel %vm671_vm11, %v678_v12, %v680_v19 }
 0x107   : > { %v685_v24 = vsel %vm671_vm11, %v682_v15, %v684_v20  ;;  %v546_v26 = vsel %vm545_vm9, %v544_v39, 0  ;;  %v677_v35 = vsel %vm671_vm11, %v674_v11, %v676_v18  ;;  %v542_v45 = vor.u32 8388608, %v2559_v43 }
 0x108   : > { %v2586_v28 = vsub.s32 %v490_v56, %v493_v17  ;;  %v2589_v30 = vmul.u32.u64.low %v2555_v42, %v685_v24  ;;  %v2590_v34 = vmul.u32.u64.high %v2555_v42, %v685_v24, %v2589_v30  ;;  %v548_v44 = vand.u32 31, %v546_v26 }
 0x109   : > { %v2594_v37 = vmul.u32.u64.low %v2555_v42, %v681_v22  ;;  %v2595_v41 = vmul.u32.u64.high %v2555_v42, %v681_v22, %v2594_v37  ;;  %v326_v47 = vand.u32 2147483647, %v2509_v27  ;;  %v352_v48 = vshll.u32 %v2434_v0, %v2553_v40 }
 0x10a   : > { %v496_v39 = vsub.s32 0, %v2586_v28  ;;  %v353_v51 = vshrl.u32 %v2435_v3, %v2581_v21  ;;  %v549_v46 = vsub.s32 32, %v548_v44  ;;  %v693_v52 = vmul.u32 %v2555_v42, %v677_v35 }
 0x10b   : > { %vm695_vm14 = vc.u32 %v2590_v34, %v2594_v37  ;;  %v547_v53 = vshrl.u32 %v546_v26, 5  ;;  %v551_v54 = vshll.u32 %v2431_v55, %v548_v44  ;;  %v696_v43 = vadd.s32 1, %v2595_v41 }
 0x10c   : > { %v552_v49 = vshrl.u32 %v2432_v57, %v549_v46  ;;  %v554_v56 = vshll.u32 %v2432_v57, %v548_v44  ;;  %v555_v58 = vshrl.u32 %v2433_v61, %v549_v46  ;;  %v557_v59 = vshll.u32 %v2433_v61, %v548_v44 }
 0x10d   : > { %v558_v60 = vshrl.u32 %v2434_v0, %v549_v46  ;;  %v560_v42 = vshll.u32 %v2434_v0, %v548_v44  ;;  %v561_v62 = vshrl.u32 %v2435_v3, %v549_v46  ;;  %v1997_v63 = vmin.u32 %v496_v39, %v2586_v28 }
 0x10e   : > { %v697_v1 = vsel %vm695_vm14, %v696_v43, %v2595_v41  ;;  %v563_v2 = vshll.u32 %v2435_v3, %v548_v44  ;;  %v564_v4 = vshrl.u32 %v2436_v6, %v549_v46  ;;  %v553_v7 = vor.u32 %v552_v49, %v551_v54 }
 0x10f   : > { %v698_v5 = vadd.s32 %v697_v1, %v693_v52  ;;  %v556_v8 = vor.u32 %v555_v58, %v554_v56  ;;  %v562_v9 = vor.u32 %v561_v62, %v560_v42  ;;  %v2622_v11 = vshrl.u32 %v2541_v29, 5 }
 0x110   : > { %v559_v12 = vor.u32 %v558_v60, %v557_v59  ;;  %v565_v13 = vor.u32 %v564_v4, %v563_v2  ;;  %v2626_v14 = vand.u32 8388607, %v326_v47  ;;  %v354_v15 = vor.u32 %v353_v51, %v352_v48 }
 0x111   : > { %v356_v16 = vshrl.u32 %v2436_v6, %v2581_v21  ;;  %v699_v17 = vadd.s32 536870912, %v698_v5  ;;  %vm569_vm15 = vcmp.lt.s32.totalorder %v547_v53, 4  ;;  %v498_v18 = vclz %v1997_v63 }
 0x112   : > { %v355_v19 = vshll.u32 %v2435_v3, %v2553_v40  ;;  %vm566_vm0 = vcmp.lt.s32.totalorder %v547_v53, 1  ;;  %v575_v20 = vsel %vm569_vm15, %v562_v9, 920167782  ;;  %vm568_vm1 = vcmp.lt.s32.totalorder %v547_v53, 3 }
 0x113   : > { %v2632_v29 = vshrl.u32 %v699_v17, 30  ;;  %v574_v22 = vsel %vm566_vm0, %v553_v7, %v556_v8  ;;  %v582_v24 = vshll.u32 %v542_v45, 8  ;;  %v571_v26 = vsel %vm569_vm15, %v559_v12, 2102212464 }
 0x114   : > { %v576_v30 = vsel %vm568_vm1, %v559_v12, %v575_v20  ;;  %v578_v35 = vsel %vm566_vm0, %v556_v8, %v559_v12  ;;  %v579_v41 = vsel %vm569_vm15, %v565_v13, 1326507024  ;;  %v357_v44 = vor.u32 %v356_v16, %v355_v19 }
 0x115   : > { %v701_v39 = vshll.u32 %v2632_v29, 30  ;;  %v550_v48 = vshrl.u32 %v2431_v55, %v549_v46  ;;  %vm567_vm2 = vcmp.lt.s32.totalorder %v547_v53, 2  ;;  %v1998_v51 = vadd.s32 4294967294, %v498_v18 }
 0x116   : > { %v577_v52 = vsel %vm567_vm2, %v574_v22, %v576_v30  ;;  %v580_v54 = vsel %vm568_vm1, %v562_v9, %v579_v41  ;;  %v344_v43 = vshrl.u32 %v2432_v57, %v2581_v21  ;;  %v572_v56 = vsel %vm568_vm1, %v556_v8, %v571_v26 }
 0x117   : > { %v2642_v45 = vsub.s32 %v698_v5, %v701_v39  ;;  %v570_v49 = vsel %vm566_vm0, %v550_v48, %v553_v7  ;;  %v581_v58 = vsel %vm567_vm2, %v578_v35, %v580_v54  ;;  %vm361_vm3 = vcmp.lt.s32.totalorder %v2622_v11, 4 }
 0x118   : > { %v2646_v59 = vmul.u32.u64.low %v582_v24, %v581_v58  ;;  %v2647_v60 = vmul.u32.u64.high %v582_v24, %v581_v58, %v2646_v59  ;;  %v2649_v42 = vmul.u32.u64.low %v582_v24, %v577_v52  ;;  %v2650_v46 = vmul.u32.u64.high %v582_v24, %v577_v52, %v2649_v42 }
 0x119   : > { %v704_v62 = vsub.s32 0, %v2642_v45  ;;  %v334_v63 = vor.u32 8388608, %v2626_v14  ;;  %v343_v1 = vshll.u32 %v2431_v55, %v2553_v40  ;;  %v573_v2 = vsel %vm567_vm2, %v570_v49, %v572_v56 }
 0x11a   : > { %v346_v53 = vshll.u32 %v2432_v57, %v2553_v40  ;;  %v347_v4 = vshrl.u32 %v2433_v61, %v2581_v21  ;;  %v350_v5 = vshrl.u32 %v2434_v0, %v2581_v21  ;;  %vm1999_vm4 = vcmp.lt.s32.totalorder %v1998_v51, 0 }
 0x11b   : > { %v2005_v7 = vmin.u32 %v704_v62, %v2642_v45  ;;  %v345_v8 = vor.u32 %v344_v43, %v343_v1  ;;  %v349_v9 = vshll.u32 %v2433_v61, %v2553_v40  ;;  %v371_v12 = vsel %vm361_vm3, %v357_v44, 1326507024 }
 0x11c   : > { %vm591_vm5 = vc.u32 %v2647_v60, %v2649_v42  ;;  %v592_v13 = vadd.s32 1, %v2650_v46  ;;  %v348_v14 = vor.u32 %v347_v4, %v346_v53  ;;  %v367_v16 = vsel %vm361_vm3, %v354_v15, 920167782 }
 0x11d   : > { %v706_v17 = vclz %v2005_v7  ;;  %v589_v18 = vmul.u32 %v582_v24, %v573_v2  ;;  %v351_v19 = vor.u32 %v350_v5, %v349_v9  ;;  %v501_v20 = vsel %vm1999_vm4, 0, %v1998_v51 }
 0x11e   : > { %v593_v22 = vsel %vm591_vm5, %v592_v13, %v2650_v46  ;;  %vm358_vm6 = vcmp.lt.s32.totalorder %v2622_v11, 1  ;;  %vm360_vm7 = vcmp.lt.s32.totalorder %v2622_v11, 3  ;;  %v342_v48 = vshrl.u32 %v2431_v55, %v2581_v21 }
 0x11f   : > { %v2006_v40 = vadd.s32 4294967294, %v706_v17  ;;  %v594_v26 = vadd.s32 %v593_v22, %v589_v18  ;;  %v366_v30 = vsel %vm358_vm6, %v345_v8, %v348_v14  ;;  %v372_v35 = vsel %vm360_vm7, %v354_v15, %v371_v12 }
 0x120   : > { %v363_v41 = vsel %vm361_vm3, %v351_v19, 2102212464  ;;  %v368_v24 = vsel %vm360_vm7, %v351_v19, %v367_v16  ;;  %v370_v44 = vsel %vm358_vm6, %v348_v14, %v351_v19  ;;  %vm359_vm8 = vcmp.lt.s32.totalorder %v2622_v11, 2 }
 0x121   : > { %v595_v39 = vadd.s32 536870912, %v594_v26  ;;  %v506_v51 = vsub.s32 4294967266, %v501_v20  ;;  %v369_v52 = vsel %vm359_vm8, %v366_v30, %v368_v24  ;;  %v373_v54 = vsel %vm359_vm8, %v370_v44, %v372_v35 }
 0x122   : > { %v374_v43 = vshll.u32 %v334_v63, 8  ;;  %vm2007_vm9 = vcmp.lt.s32.totalorder %v2006_v40, 0  ;;  %v362_v49 = vsel %vm358_vm6, %v342_v48, %v345_v8  ;;  %v364_v56 = vsel %vm360_vm7, %v348_v14, %v363_v41 }
 0x123   : > { %v2690_v15 = vshrl.u32 %v595_v39, 30  ;;  %v507_v1 = vadd.s32 127, %v506_v51  ;;  %v365_v63 = vsel %vm359_vm8, %v362_v49, %v364_v56  ;;  %v709_v2 = vsel %vm2007_vm9, 0, %v2006_v40 }
 0x124   : > { %v2696_v58 = vmul.u32.u64.low %v374_v43, %v373_v54  ;;  %v2697_v59 = vmul.u32.u64.high %v374_v43, %v373_v54, %v2696_v58  ;;  %v2699_v46 = vmul.u32.u64.low %v374_v43, %v369_v52  ;;  %v2700_v21 = vmul.u32.u64.high %v374_v43, %v369_v52, %v2699_v46 }
 0x125   : > { %v597_v62 = vshll.u32 %v2690_v15, 30  ;;  %v502_v4 = vsub.s32 32, %v501_v20  ;;  %v381_v7 = vmul.u32 %v374_v43, %v365_v63  ;;  %v486_v8 = vadd.s32 %v2548_v33, %v2545_v32 }
 0x126   : > { %vm383_vm10 = vc.u32 %v2697_v59, %v2699_v46  ;;  %v384_v11 = vadd.s32 1, %v2700_v21  ;;  %v508_v9 = vshll.u32 %v507_v1, 23  ;;  %v714_v12 = vsub.s32 4294967266, %v709_v2 }
 0x127   : > { %v598_v53 = vsub.s32 %v594_v26, %v597_v62  ;;  %v504_v17 = vshrl.u32 %v486_v8, %v502_v4  ;;  %v503_v22 = vshll.u32 %v2586_v28, %v501_v20  ;;  %v710_v24 = vsub.s32 32, %v709_v2 }
 0x128   : > { %v385_v13 = vsel %vm383_vm10, %v384_v11, %v2700_v21  ;;  %v509_v40 = vor.u32 4788187, %v508_v9  ;;  %v715_v26 = vadd.s32 127, %v714_v12  ;;  %v694_v44 = vadd.s32 %v2594_v37, %v2590_v34 }
 0x129   : > { %v600_v5 = vsub.s32 0, %v598_v53  ;;  %v386_v16 = vadd.s32 %v385_v13, %v381_v7  ;;  %v505_v41 = vor.u32 %v504_v17, %v503_v22  ;;  %v590_v51 = vadd.s32 %v2649_v42, %v2647_v60 }
 0x12a   : > { %v510_v33 = vand.u32 2147483647, %v509_v40  ;;  %v716_v39 = vshll.u32 %v715_v26, 23  ;;  %v712_v43 = vshrl.u32 %v694_v44, %v710_v24  ;;  %v711_v1 = vshll.u32 %v2642_v45, %v709_v2 }
 0x12b   : > { %v2001_v14 = vmin.u32 %v600_v5, %v598_v53  ;;  %v387_v19 = vadd.s32 536870912, %v386_v16  ;;  %v512_v54 = vcvt.s32.f32 %v505_v41  ;;  %vm432_vm12 = vcmp.lt.s32.totalorder %v2505_v23, 0 }
 0x12c   : > { %v717_v63 = vor.u32 4788187, %v716_v39  ;;  %v713_v11 = vor.u32 %v712_v43, %v711_v1  ;;  %v382_v17 = vadd.s32 %v2699_v46, %v2697_v59  ;;  %vm536_vm14 = vcmp.lt.s32.totalorder %v2518_v38, 0 }
 0x12d   : > { %v602_v18 = vclz %v2001_v14  ;;  %v2711_v35 = vshrl.u32 %v387_v19, 30  ;;  %v513_v62 = vmul.f32 %v512_v54, %v510_v33  ;;  %vm2727_vm15 = vcmp.le.f32.partialorder %v430_v25, 0.7853982 }
 0x12e   : > { %v718_v42 = vand.u32 2147483647, %v717_v63  ;;  %v720_v13 = vcvt.s32.f32 %v713_v11  ;;  %vm2738_vm0 = vcmp.le.f32.partialorder %v534_v50, 0.7853982  ;;  %vm640_vm1 = vcmp.lt.s32.totalorder %v2512_v31, 0 }
 0x12f   : > { %v2002_v30 = vadd.s32 4294967294, %v602_v18  ;;  %v389_v32 = vshll.u32 %v2711_v35, 30  ;;  %v514_v60 = vxor.u32 2147483648, %v513_v62  ;;  %v516_v50 = vsub.s32 4, %v2577_v10 }
 0x130   : > { %v721_v2 = vmul.f32 %v720_v13, %v718_v42  ;;  %vm2751_vm2 = vcmp.le.f32.partialorder %v638_v36, 0.7853982  ;;  %vm328_vm3 = vcmp.lt.s32.totalorder %v2509_v27, 0  ;;  %vm2762_vm4 = vcmp.le.f32.partialorder %v326_v47, 0.7853982 }
 0x131   : > { %vm2003_vm11 = vcmp.lt.s32.totalorder %v2002_v30, 0  ;;  %v390_v52 = vsub.s32 %v386_v16, %v389_v32  ;;  %v515_v45 = vsel %vm432_vm12, %v514_v60, %v513_v62  ;;  %v412_v36 = vsub.s32 4, %v2711_v35 }
 0x132   : > { %v605_v48 = vsel %vm2003_vm11, 0, %v2002_v30  ;;  %v722_v24 = vxor.u32 2147483648, %v721_v2  ;;  %v518_v59 = vsel %vm2727_vm15, %v2505_v23, %v515_v45  ;;  %v724_v62 = vsub.s32 4, %v2632_v29 }
 0x133   : > { %v606_v28 = vsub.s32 32, %v605_v48  ;;  %v610_v20 = vsub.s32 4294967266, %v605_v48  ;;  %v607_v49 = vshll.u32 %v598_v53, %v605_v48  ;;  %v392_v21 = vsub.s32 0, %v390_v52 }
 0x134   : > { %2342 = vcosq.f32 %v518_v59  ;;  %v723_v39 = vsel %vm640_vm1, %v722_v24, %v721_v2  ;;  %v413_v63 = vsel %vm328_vm3, %v412_v36, %v2711_v35  ;;  %vm418_vm9 = vweird.f32 %v2509_v27  ;;  %v1278_v36 = vld [vmem:[#allocation2 + $0xd0] sm:$0xff] }
 0x135   : > { %v608_v56 = vshrl.u32 %v590_v51, %v606_v28  ;;  %v611_v58 = vadd.s32 127, %v610_v20  ;;  %v1993_v37 = vmin.u32 %v392_v21, %v390_v52  ;;  %2344 = vsinq.f32 %v518_v59 }
 0x136   : > { %v726_v54 = vsel %vm2751_vm2, %v2512_v31, %v723_v39  ;;  %v415_v11 = vsel %vm2762_vm4, 0, %v413_v63  ;;  %v1271_v63 = vld [vmem:[#allocation2 + $0x98] sm:$0xff] }
 0x137   : > { %v609_v4 = vor.u32 %v608_v56, %v607_v49  ;;  %v612_v34 = vshll.u32 %v611_v58, 23  ;;  %v394_v7 = vclz %v1993_v37  ;;  %v517_v56 = vsel %vm432_vm12, %v516_v50, %v2577_v10  ;;  %v1279_v49 = vld [vmem:[#allocation2 + $0xd8] sm:$0xff] }
 0x138   : > { %v519_v1 = vsel %vm2727_vm15, 0, %v517_v56  ;;  %v419_v42 = vadd.s32 3, %v415_v11  ;;  %v1276_v56 = vld [vmem:[#allocation2 + $0xc0] sm:$0xff] }
 0x139   : > { %v613_v5 = vor.u32 4788187, %v612_v34  ;;  %v616_v9 = vcvt.s32.f32 %v609_v4  ;;  %v1994_v12 = vadd.s32 4294967294, %v394_v7  ;;  %v523_v34 = vadd.s32 3, %v519_v1  ;;  %v2009_v1 = vld [vmem:[%s3385_s3 + $0x1] ss:$0 sm:$0xff] }
 0x13b   : > { %v614_v8 = vand.u32 2147483647, %v613_v5  ;;  %vm1995_vm13 = vcmp.lt.s32.totalorder %v1994_v12, 0 }
 0x13c   : > { %v397_v14 = vsel %vm1995_vm13, 0, %v1994_v12 }
 0x13d   : > { %v617_v53 = vmul.f32 %v616_v9, %v614_v8  ;;  %v398_v18 = vsub.s32 32, %v397_v14  ;;  %v402_v19 = vsub.s32 4294967266, %v397_v14  ;;  %v399_v26 = vshll.u32 %v390_v52, %v397_v14 }
 0x13e   : > { %v620_v52 = vsub.s32 4, %v2690_v15  ;;  %v524_v8 = vand.u32 3, %v523_v34 }
 0x13f   : > { %v618_v16 = vxor.u32 2147483648, %v617_v53  ;;  %v400_v30 = vshrl.u32 %v382_v17, %v398_v18  ;;  %v403_v41 = vadd.s32 127, %v402_v19 }
 0x140   : > { %v621_v21 = vsel %vm536_vm14, %v620_v52, %v2690_v15  ;;  %v725_v15 = vsel %vm640_vm1, %v724_v62, %v2632_v29  ;;  %vm526_vm5 = vcmp.eq.s32.totalorder %v524_v8, 0  ;;  %vm529_vm6 = vcmp.eq.s32.totalorder %v524_v8, 2  ;;  %v1273_v62 = vld [vmem:[#allocation2 + $0xa8] sm:$0xff] }
 0x141   : > { %v619_v40 = vsel %vm536_vm14, %v618_v16, %v617_v53  ;;  %v401_v46 = vor.u32 %v400_v30, %v399_v26  ;;  %v404_v32 = vshll.u32 %v403_v41, 23  ;;  %v623_v10 = vsel %vm2738_vm0, 0, %v621_v21  ;;  %v2343_v4 = vpop.eup %2342  ;;  %v1274_v21 = vld [vmem:[#allocation2 + $0xb0] sm:$0xff] }
 0x142   : > { %v622_v33 = vsel %vm2738_vm0, %v2518_v38, %v619_v40  ;;  %v2345_v37 = vpop.eup %2344  ;;  %v627_v5 = vadd.s32 3, %v623_v10  ;;  %v727_v60 = vsel %vm2751_vm2, 0, %v725_v15  ;;  %v530_v53 = vxor.u32 2147483648, %v2343_v4  ;;  %v1270_v15 = vld [vmem:[#allocation2 + $0x90] sm:$0xff] }
 0x143   : > { %v405_v44 = vor.u32 4788187, %v404_v32  ;;  %v408_v51 = vcvt.s32.f32 %v401_v46  ;;  %2346 = vcosq.f32 %v622_v33  ;;  %v731_v12 = vadd.s32 3, %v727_v60 }
 0x144   : > { %2348 = vsinq.f32 %v622_v33  ;;  %v628_v9 = vand.u32 3, %v627_v5  ;;  %v527_v13 = vxor.u32 2147483648, %v2345_v37  ;;  %v420_v16 = vand.u32 3, %v419_v42 }
 0x145   : > { %v406_v48 = vand.u32 2147483647, %v405_v44  ;;  %2350 = vcosq.f32 %v726_v54  ;;  %v732_v17 = vand.u32 3, %v731_v12  ;;  %v531_v22 = vsel %vm529_vm6, %v530_v53, %v2345_v37  ;;  %v1269_v37 = vld [vmem:[#allocation2 + $0x88] sm:$0xff] }
 0x146   : > { %2352 = vsinq.f32 %v726_v54  ;;  %vm630_vm7 = vcmp.eq.s32.totalorder %v628_v9, 0  ;;  %vm633_vm8 = vcmp.eq.s32.totalorder %v628_v9, 2  ;;  %v528_v19 = vsel %vm526_vm5, %v2343_v4, %v527_v13 }
 0x147   : > { %v409_v20 = vmul.f32 %v408_v51, %v406_v48  ;;  %vm425_vm10 = vcmp.eq.s32.totalorder %v420_v16, 2  ;;  %vm525_vm11 = vcmp.lt.s32.totalorder %v524_v8, 2  ;;  %vm629_vm12 = vcmp.lt.s32.totalorder %v628_v9, 2 }
 0x148   : > { %vm422_vm13 = vcmp.eq.s32.totalorder %v420_v16, 0  ;;  %v532_v25 = vsel %vm525_vm11, %v528_v19, %v531_v22  ;;  %vm421_vm14 = vcmp.lt.s32.totalorder %v420_v16, 2  ;;  %vm734_vm15 = vcmp.eq.s32.totalorder %v732_v17, 0 }
 0x149   : > { %v410_v43 = vxor.u32 2147483648, %v409_v20  ;;  %vm737_vm0 = vcmp.eq.s32.totalorder %v732_v17, 2  ;;  %vm626_vm1 = vweird.f32 %v2518_v38  ;;  %vm522_vm2 = vweird.f32 %v2505_v23  ;;  %v1282_v38 = vld [vmem:[#allocation2 + $0xf0] sm:$0xff]  ;;  %v1280_v23 = vld [vmem:[#allocation2 + $0xe0] sm:$0xff] }
 0x14b   : > { %v411_v58 = vsel %vm328_vm3, %v410_v43, %v409_v20  ;;  %v533_v20 = vsel %vm522_vm2, nan, %v532_v25  ;;  %vm733_vm3 = vcmp.lt.s32.totalorder %v732_v17, 2  ;;  %v1283_v43 = vld [vmem:[#allocation2 + $0xf8] sm:$0xff] }
 0x14c   : > { %v414_v47 = vsel %vm2762_vm4, %v2509_v27, %v411_v58  ;;  %vm730_vm4 = vweird.f32 %v2512_v31  ;;  %2159 = vmatprep.subr.mxu0 %v1283_v43  ;;  %v1281_v27 = vld [vmem:[#allocation2 + $0xe8] sm:$0xff]  ;;  %v1275_v58 = vld [vmem:[#allocation2 + $0xb8] sm:$0xff] }
 0x14d   : > { %2354 = vcosq.f32 %v414_v47  ;;  %2160 = vmatpush3.msra.mxu0 %v1283_v43  ;;  %v1277_v31 = vld [vmem:[#allocation2 + $0xc8] sm:$0xff] }
 0x14e   : > { %2356 = vsinq.f32 %v414_v47  ;;  %2161 = vmatprep.subr.mxu0 %v1282_v38  ;;  %v1272_v47 = vld [vmem:[#allocation2 + $0xa0] sm:$0xff] }
 0x14f   : > { %2162 = vmatpush3.msra.mxu0 %v1282_v38 }
 0x150   : > { %v2347_v7 = vpop.eup %2346  ;;  %2163 = vmatprep.subr.mxu0 %v1281_v27 }
 0x151   : > { %v2349_v35 = vpop.eup %2348  ;;  %v634_v29 = vxor.u32 2147483648, %v2347_v7  ;;  %2164 = vmatpush3.msra.mxu0 %v1281_v27 }
 0x152   : > { %v631_v45 = vxor.u32 2147483648, %v2349_v35  ;;  %v2351_v2 = vpop.eup %2350  ;;  %2165 = vmatprep.subr.mxu0 %v1280_v23 }
 0x153   : > { %v2353_v14 = vpop.eup %2352  ;;  %v635_v26 = vsel %vm633_vm8, %v634_v29, %v2349_v35  ;;  %v738_v59 = vxor.u32 2147483648, %v2351_v2  ;;  %2166 = vmatpush3.msra.mxu0 %v1280_v23  ;;  %v1268_v35 = vld [vmem:[#allocation2 + $0x80] sm:$0xff] }
 0x154   : > { %v632_v40 = vsel %vm630_vm7, %v2347_v7, %v631_v45  ;;  %v735_v24 = vxor.u32 2147483648, %v2353_v14  ;;  %2167 = vmatprep.subr.mxu0 %v1279_v49 }
 0x155   : > { %v636_v33 = vsel %vm629_vm12, %v632_v40, %v635_v26  ;;  %v739_v51 = vsel %vm737_vm0, %v738_v59, %v2353_v14  ;;  %2168 = vmatpush3.msra.mxu0 %v1279_v49 }
 0x156   : > { %v736_v48 = vsel %vm734_vm15, %v2351_v2, %v735_v24  ;;  %v637_v28 = vsel %vm626_vm1, nan, %v636_v33  ;;  %2169 = vmatprep.subr.mxu0 %v1278_v36 }
 0x157   : > { %v740_v52 = vsel %vm733_vm3, %v736_v48, %v739_v51  ;;  %2170 = vmatpush3.msra.mxu0 %v1278_v36 }
 0x158   : > { %v741_v54 = vsel %vm730_vm4, nan, %v740_v52  ;;  %2171 = vmatprep.subr.mxu0 %v1277_v31 }
 0x159   : > { %2172 = vmatpush3.msra.mxu0 %v1277_v31 }
 0x15a   : > { %v2355_v18 = vpop.eup %2354  ;;  %2173 = vmatprep.subr.mxu0 %v1276_v56 }
 0x15b   : > { %v2357_v30 = vpop.eup %2356  ;;  %v426_v41 = vxor.u32 2147483648, %v2355_v18  ;;  %2174 = vmatpush3.msra.mxu0 %v1276_v56 }
 0x15c   : > { %v423_v46 = vxor.u32 2147483648, %v2357_v30  ;;  %2175 = vmatprep.subr.mxu0 %v1275_v58 }
 0x15d   : > { %v427_v32 = vsel %vm425_vm10, %v426_v41, %v2357_v30  ;;  %2176 = vmatpush3.msra.mxu0 %v1275_v58 }
 0x15e   : > { %v424_v44 = vsel %vm422_vm13, %v2355_v18, %v423_v46  ;;  %2177 = vmatprep.subr.mxu0 %v1274_v21 }
 0x15f   : > { %v428_v39 = vsel %vm421_vm14, %v424_v44, %v427_v32  ;;  %2178 = vmatpush3.msra.mxu0 %v1274_v21 }
 0x160   : > { %v429_v50 = vsel %vm418_vm9, nan, %v428_v39  ;;  %2179 = vmatprep.subr.mxu0 %v1273_v62 }
 0x161   : > { %2153 = vmatprep.mubr.f32.mxu1 %v429_v50  ;;  %2180 = vmatpush3.msra.mxu0 %v1273_v62 }
 0x162   : > { %2154 = vmatmul.mubr.f32.vlgmr.msra.gmra.mxu1 %v533_v20  ;;  %2181 = vmatprep.subr.mxu0 %v1272_v47 }
 0x163   : > { %2156 = vmatprep.mubr.f32.mxu1 %v637_v28  ;;  %2182 = vmatpush3.msra.mxu0 %v1272_v47 }
 0x164   : > { %2183 = vmatprep.subr.mxu0 %v1271_v63 }
 0x165   : > { %2184 = vmatpush3.msra.mxu0 %v1271_v63 }
 0x166   : > { %2157 = vmatmul.mubr.f32.gmra.mxu1 %v741_v54  ;;  %2185 = vmatprep.subr.mxu0 %v1270_v15 }
 0x167   : > { %2186 = vmatpush3.msra.mxu0 %v1270_v15 }
 0x168   : > { %2187 = vmatprep.subr.mxu0 %v1269_v37 }
 0x169   : > { %2188 = vmatpush3.msra.mxu0 %v1269_v37 }
 0x16a   : > { %2189 = vmatprep.subr.mxu0 %v1268_v35 }
 0x16b   : > { %2190 = vmatpush3.msra.mxu0 %v1268_v35 }
 0x222   : > { %v2155_v10 = vpop.f32.mrf.mxu1 }
 0x223   : > { %v2798_v4 = vadd.f32 %v2155_v10, %v2009_v1 }
 0x224   : > { %v832_v34 = vpop.f32.mrf.mxu1 }
 0x225   : > { %v955_v11 = vand.u32 2147483647, %v2798_v4  ;;  %v958_v5 = vand.u32 2139095040, %v2798_v4  ;;  %v2802_v7 = vadd.f32 %v2009_v1, %v832_v34 }
 0x226   : > { %v2158_v60 = vpop.f32.mrf.mxu1 }
 0x227   : > { %v959_v42 = vshrl.u32 %v958_v5, 23  ;;  %v962_v8 = vand.u32 8388607, %v955_v11  ;;  %v851_v9 = vand.u32 2147483647, %v2802_v7  ;;  %v854_v12 = vand.u32 2139095040, %v2802_v7 }
 0x228   : > { %v2808_v13 = vadd.f32 %v2158_v60, %v2009_v1  ;;  %v842_v53 = vpop.f32.mrf.mxu1 }
 0x229   : > { %v2014_v45 = vadd.s32 4294967169, %v959_v42  ;;  %v2810_v29 = vadd.f32 %v2009_v1, %v842_v53  ;;  %v855_v2 = vshrl.u32 %v854_v12, 23  ;;  %v858_v14 = vand.u32 8388607, %v851_v9 }
 0x22a   : > { %v1163_v16 = vand.u32 2147483647, %v2808_v13  ;;  %v963_v17 = vor.u32 8388608, %v962_v8  ;;  %v1166_v19 = vand.u32 2139095040, %v2808_v13 }
 0x22b   : > { %v965_v18 = vadd.s32 1, %v2014_v45  ;;  %v1059_v22 = vand.u32 2147483647, %v2810_v29  ;;  %v2010_v40 = vadd.s32 4294967169, %v855_v2  ;;  %v859_v26 = vor.u32 8388608, %v858_v14 }
 0x22c   : > { %v2819_v30 = vand.u32 8388607, %v1163_v16  ;;  %v1167_v41 = vshrl.u32 %v1166_v19, 23  ;;  %v1062_v24 = vand.u32 2139095040, %v2810_v29  ;;  %v2822_v33 = vshll.u32 %v963_v17, 8 }
 0x22d   : > { %vm966_vm5 = vcmp.gt.s32.totalorder %v965_v18, 0  ;;  %v861_v46 = vadd.s32 1, %v2010_v40  ;;  %v2826_v44 = vand.u32 8388607, %v1059_v22  ;;  %v2828_v39 = vshll.u32 %v859_v26, 8 }
 0x22e   : > { %v967_v59 = vsel %vm966_vm5, %v965_v18, 0  ;;  %v2830_v48 = vadd.s32 4294967169, %v1167_v41  ;;  %v1171_v51 = vor.u32 8388608, %v2819_v30  ;;  %v2833_v50 = vshrl.u32 %v1062_v24, 23 }
 0x22f   : > { %v968_v32 = vshrl.u32 %v967_v59, 5  ;;  %v969_v25 = vand.u32 31, %v967_v59  ;;  %vm862_vm6 = vcmp.gt.s32.totalorder %v861_v46, 0 }
 0x230   : > { %v863_v47 = vsel %vm862_vm6, %v861_v46, 0 }
 0x231   : > { %v970_v28 = vsub.s32 32, %v969_v25  ;;  %v972_v20 = vshll.u32 %v2431_v55, %v969_v25  ;;  %v975_v52 = vshll.u32 %v2432_v57, %v969_v25  ;;  %v978_v54 = vshll.u32 %v2433_v61, %v969_v25 }
 0x232   : > { %v981_v43 = vshll.u32 %v2434_v0, %v969_v25  ;;  %v984_v38 = vshll.u32 %v2435_v3, %v969_v25  ;;  %vm987_vm7 = vcmp.lt.s32.totalorder %v968_v32, 1  ;;  %vm988_vm8 = vcmp.lt.s32.totalorder %v968_v32, 2 }
 0x233   : > { %v973_v27 = vshrl.u32 %v2432_v57, %v970_v28  ;;  %v976_v23 = vshrl.u32 %v2433_v61, %v970_v28  ;;  %v979_v49 = vshrl.u32 %v2434_v0, %v970_v28  ;;  %v971_v36 = vshrl.u32 %v2431_v55, %v970_v28 }
 0x234   : > { %v982_v31 = vshrl.u32 %v2435_v3, %v970_v28  ;;  %v985_v56 = vshrl.u32 %v2436_v6, %v970_v28  ;;  %vm989_vm9 = vcmp.lt.s32.totalorder %v968_v32, 3  ;;  %vm990_vm10 = vcmp.lt.s32.totalorder %v968_v32, 4 }
 0x235   : > { %v974_v58 = vor.u32 %v973_v27, %v972_v20  ;;  %v977_v21 = vor.u32 %v976_v23, %v975_v52  ;;  %v980_v62 = vor.u32 %v979_v49, %v978_v54  ;;  %v865_v10 = vand.u32 31, %v863_v47 }
 0x236   : > { %v983_v1 = vor.u32 %v982_v31, %v981_v43  ;;  %v986_v63 = vor.u32 %v985_v56, %v984_v38  ;;  %v864_v2 = vshrl.u32 %v863_v47, 5 }
 0x237   : > { %v991_v15 = vsel %vm987_vm7, %v971_v36, %v974_v58  ;;  %v992_v34 = vsel %vm990_vm10, %v980_v62, 2102212464  ;;  %v995_v37 = vsel %vm987_vm7, %v974_v58, %v977_v21  ;;  %v999_v5 = vsel %vm987_vm7, %v977_v21, %v980_v62 }
 0x238   : > { %v993_v60 = vsel %vm989_vm9, %v977_v21, %v992_v34  ;;  %v996_v35 = vsel %vm990_vm10, %v983_v1, 920167782  ;;  %v1000_v42 = vsel %vm990_vm10, %v986_v63, 1326507024  ;;  %v866_v8 = vsub.s32 32, %v865_v10 }
 0x239   : > { %v994_v12 = vsel %vm988_vm8, %v991_v15, %v993_v60  ;;  %v997_v53 = vsel %vm989_vm9, %v980_v62, %v996_v35  ;;  %v1001_v45 = vsel %vm989_vm9, %v983_v1, %v1000_v42  ;;  %v868_v19 = vshll.u32 %v2431_v55, %v865_v10 }
 0x23a   : > { %v998_v14 = vsel %vm988_vm8, %v995_v37, %v997_v53  ;;  %v1002_v17 = vsel %vm988_vm8, %v999_v5, %v1001_v45  ;;  %v1010_v18 = vmul.u32 %v2822_v33, %v994_v12  ;;  %v867_v59 = vshrl.u32 %v2431_v55, %v866_v8 }
 0x23b   : > { %v2859_v40 = vmul.u32.u64.low %v2822_v33, %v1002_v17  ;;  %v2860_v26 = vmul.u32.u64.high %v2822_v33, %v1002_v17, %v2859_v40  ;;  %v2863_v41 = vmul.u32.u64.low %v2822_v33, %v998_v14  ;;  %v2864_v24 = vmul.u32.u64.high %v2822_v33, %v998_v14, %v2863_v41 }
 0x23c   : > { %v869_v46 = vshrl.u32 %v2432_v57, %v866_v8  ;;  %v871_v25 = vshll.u32 %v2432_v57, %v865_v10  ;;  %v872_v32 = vshrl.u32 %v2433_v61, %v866_v8  ;;  %v874_v28 = vshll.u32 %v2433_v61, %v865_v10 }
 0x23d   : > { %v875_v20 = vshrl.u32 %v2434_v0, %v866_v8  ;;  %v877_v52 = vshll.u32 %v2434_v0, %v865_v10  ;;  %v878_v54 = vshrl.u32 %v2435_v3, %v866_v8  ;;  %v880_v33 = vshll.u32 %v2435_v3, %v865_v10 }
 0x23e   : > { %v870_v43 = vor.u32 %v869_v46, %v868_v19  ;;  %v873_v38 = vor.u32 %v872_v32, %v871_v25  ;;  %v881_v27 = vshrl.u32 %v2436_v6, %v866_v8  ;;  %vm1012_vm11 = vc.u32 %v2860_v26, %v2863_v41 }
 0x23f   : > { %v1013_v23 = vadd.s32 1, %v2864_v24  ;;  %v876_v49 = vor.u32 %v875_v20, %v874_v28  ;;  %vm883_vm12 = vcmp.lt.s32.totalorder %v864_v2, 1  ;;  %v879_v36 = vor.u32 %v878_v54, %v877_v52 }
 0x240   : > { %v882_v31 = vor.u32 %v881_v27, %v880_v33  ;;  %vm884_vm13 = vcmp.lt.s32.totalorder %v864_v2, 2  ;;  %vm885_vm14 = vcmp.lt.s32.totalorder %v864_v2, 3  ;;  %vm886_vm15 = vcmp.lt.s32.totalorder %v864_v2, 4 }
 0x241   : > { %v1014_v56 = vsel %vm1012_vm11, %v1013_v23, %v2864_v24  ;;  %v887_v58 = vsel %vm883_vm12, %v867_v59, %v870_v43  ;;  %v891_v21 = vsel %vm883_vm12, %v870_v43, %v873_v38  ;;  %v888_v47 = vsel %vm886_vm15, %v876_v49, 2102212464 }
 0x242   : > { %v1015_v62 = vadd.s32 %v1014_v56, %v1010_v18  ;;  %v892_v1 = vsel %vm886_vm15, %v879_v36, 920167782  ;;  %v895_v63 = vsel %vm883_vm12, %v873_v38, %v876_v49  ;;  %v889_v10 = vsel %vm885_vm14, %v873_v38, %v888_v47 }
 0x243   : > { %v893_v15 = vsel %vm885_vm14, %v876_v49, %v892_v1  ;;  %v896_v34 = vsel %vm886_vm15, %v882_v31, 1326507024  ;;  %v1173_v37 = vadd.s32 1, %v2830_v48  ;;  %v1067_v42 = vor.u32 8388608, %v2826_v44 }
 0x244   : > { %v1016_v5 = vadd.s32 536870912, %v1015_v62  ;;  %v894_v60 = vsel %vm884_vm13, %v891_v21, %v893_v15  ;;  %v897_v35 = vsel %vm885_vm14, %v879_v36, %v896_v34  ;;  %v890_v8 = vsel %vm884_vm13, %v887_v58, %v889_v10 }
 0x245   : > { %v898_v12 = vsel %vm884_vm13, %v895_v63, %v897_v35  ;;  %v2885_v53 = vmul.u32.u64.low %v2828_v39, %v894_v60  ;;  %v2886_v45 = vmul.u32.u64.high %v2828_v39, %v894_v60, %v2885_v53  ;;  %vm1174_vm0 = vcmp.gt.s32.totalorder %v1173_v37, 0 }
 0x246   : > { %v2889_v14 = vshrl.u32 %v1016_v5, 30  ;;  %v2892_v17 = vmul.u32.u64.low %v2828_v39, %v898_v12  ;;  %v2893_v48 = vmul.u32.u64.high %v2828_v39, %v898_v12, %v2892_v17  ;;  %v1175_v18 = vsel %vm1174_vm0, %v1173_v37, 0 }
 0x247   : > { %v2896_v19 = vadd.s32 %v2863_v41, %v2860_v26  ;;  %v1177_v2 = vand.u32 31, %v1175_v18  ;;  %v2901_v40 = vshll.u32 %v1171_v51, 8  ;;  %v906_v24 = vmul.u32 %v2828_v39, %v890_v8 }
 0x248   : > { %v1018_v44 = vshll.u32 %v2889_v14, 30  ;;  %v909_v59 = vadd.s32 1, %v2886_v45  ;;  %v2018_v46 = vadd.s32 4294967169, %v2833_v50  ;;  %v2906_v25 = vshll.u32 %v1067_v42, 8 }
 0x249   : > { %vm908_vm1 = vc.u32 %v2893_v48, %v2885_v53  ;;  %v1176_v26 = vshrl.u32 %v1175_v18, 5  ;;  %v1178_v41 = vsub.s32 32, %v1177_v2  ;;  %v1180_v30 = vshll.u32 %v2431_v55, %v1177_v2 }
 0x24a   : > { %v2908_v32 = vsub.s32 %v1015_v62, %v1018_v44  ;;  %v910_v28 = vsel %vm908_vm1, %v909_v59, %v2886_v45  ;;  %v1183_v51 = vshll.u32 %v2432_v57, %v1177_v2  ;;  %v1186_v39 = vshll.u32 %v2433_v61, %v1177_v2 }
 0x24b   : > { %v911_v50 = vadd.s32 %v910_v28, %v906_v24  ;;  %v1179_v52 = vshrl.u32 %v2431_v55, %v1178_v41  ;;  %v1181_v54 = vshrl.u32 %v2432_v57, %v1178_v41  ;;  %v1184_v43 = vshrl.u32 %v2433_v61, %v1178_v41 }
 0x24c   : > { %v1021_v20 = vsub.s32 0, %v2908_v32  ;;  %v1187_v38 = vshrl.u32 %v2434_v0, %v1178_v41  ;;  %v1189_v33 = vshll.u32 %v2434_v0, %v1177_v2  ;;  %v1190_v27 = vshrl.u32 %v2435_v3, %v1178_v41 }
 0x24d   : > { %v912_v49 = vadd.s32 536870912, %v911_v50  ;;  %v1182_v36 = vor.u32 %v1181_v54, %v1180_v30  ;;  %v1192_v31 = vshll.u32 %v2435_v3, %v1177_v2  ;;  %v1185_v56 = vor.u32 %v1184_v43, %v1183_v51 }
 0x24e   : > { %v2015_v23 = vmin.u32 %v1021_v20, %v2908_v32  ;;  %v1188_v58 = vor.u32 %v1187_v38, %v1186_v39  ;;  %v1191_v21 = vor.u32 %v1190_v27, %v1189_v33  ;;  %v1193_v62 = vshrl.u32 %v2436_v6, %v1178_v41 }
 0x24f   : > { %v2926_v1 = vshrl.u32 %v912_v49, 30  ;;  %vm1195_vm2 = vcmp.lt.s32.totalorder %v1176_v26, 1  ;;  %v1069_v63 = vadd.s32 1, %v2018_v46  ;;  %vm1197_vm3 = vcmp.lt.s32.totalorder %v1176_v26, 3 }
 0x250   : > { %v1023_v47 = vclz %v2015_v23  ;;  %v1194_v10 = vor.u32 %v1193_v62, %v1192_v31  ;;  %vm1198_vm4 = vcmp.lt.s32.totalorder %v1176_v26, 4  ;;  %v1199_v15 = vsel %vm1195_vm2, %v1179_v52, %v1182_v36 }
 0x251   : > { %v914_v37 = vshll.u32 %v2926_v1, 30  ;;  %v1200_v5 = vsel %vm1198_vm4, %v1188_v58, 2102212464  ;;  %v1203_v60 = vsel %vm1195_vm2, %v1182_v36, %v1185_v56  ;;  %vm1196_vm5 = vcmp.lt.s32.totalorder %v1176_v26, 2 }
 0x252   : > { %v2016_v34 = vadd.s32 4294967294, %v1023_v47  ;;  %v1201_v35 = vsel %vm1197_vm3, %v1185_v56, %v1200_v5  ;;  %v1204_v42 = vsel %vm1198_vm4, %v1191_v21, 920167782  ;;  %v1208_v8 = vsel %vm1198_vm4, %v1194_v10, 1326507024 }
 0x253   : > { %v2932_v12 = vsub.s32 %v911_v50, %v914_v37  ;;  %v1205_v45 = vsel %vm1197_vm3, %v1188_v58, %v1204_v42  ;;  %v1207_v17 = vsel %vm1195_vm2, %v1185_v56, %v1188_v58  ;;  %v1202_v44 = vsel %vm1196_vm5, %v1199_v15, %v1201_v35 }
 0x254   : > { %vm2017_vm6 = vcmp.lt.s32.totalorder %v2016_v34, 0  ;;  %v1206_v2 = vsel %vm1196_vm5, %v1203_v60, %v1205_v45  ;;  %v1209_v24 = vsel %vm1197_vm3, %v1191_v21, %v1208_v8  ;;  %vm1070_vm7 = vcmp.gt.s32.totalorder %v1069_v63, 0 }
 0x255   : > { %v1026_v18 = vsel %vm2017_vm6, 0, %v2016_v34  ;;  %v917_v28 = vsub.s32 0, %v2932_v12  ;;  %v1210_v30 = vsel %vm1196_vm5, %v1207_v17, %v1209_v24  ;;  %v1071_v54 = vsel %vm1070_vm7, %v1069_v63, 0 }
 0x256   : > { %v1027_v59 = vsub.s32 32, %v1026_v18  ;;  %v1028_v46 = vshll.u32 %v2908_v32, %v1026_v18  ;;  %v1031_v41 = vsub.s32 4294967266, %v1026_v18  ;;  %v1073_v38 = vand.u32 31, %v1071_v54 }
 0x257   : > { %v2943_v51 = vmul.u32.u64.low %v2901_v40, %v1206_v2  ;;  %v2944_v39 = vmul.u32.u64.high %v2901_v40, %v1206_v2, %v2943_v51  ;;  %v2011_v52 = vmin.u32 %v917_v28, %v2932_v12  ;;  %v1041_v26 = vsub.s32 4, %v2889_v14 }
 0x258   : > { %v1029_v20 = vshrl.u32 %v2896_v19, %v1027_v59  ;;  %v1032_v50 = vadd.s32 127, %v1031_v41  ;;  %v2950_v43 = vmul.u32.u64.low %v2901_v40, %v1210_v30  ;;  %v2951_v32 = vmul.u32.u64.high %v2901_v40, %v1210_v30, %v2950_v43 }
 0x259   : > { %v907_v23 = vadd.s32 %v2885_v53, %v2893_v48  ;;  %v919_v49 = vclz %v2011_v52  ;;  %vm957_vm8 = vcmp.lt.s32.totalorder %v2798_v4, 0  ;;  %v1218_v19 = vmul.u32 %v2901_v40, %v1202_v44 }
 0x25a   : > { %v1030_v33 = vor.u32 %v1029_v20, %v1028_v46  ;;  %v1033_v27 = vshll.u32 %v1032_v50, 23  ;;  %v1221_v36 = vadd.s32 1, %v2944_v39  ;;  %v2959_v31 = vshrl.u32 %v1071_v54, 5 }
 0x25b   : > { %v1074_v56 = vsub.s32 32, %v1073_v38  ;;  %vm2963_vm9 = vcmp.le.f32.partialorder %v955_v11, 0.7853982  ;;  %v2012_v62 = vadd.s32 4294967294, %v919_v49  ;;  %v1076_v53 = vshll.u32 %v2431_v55, %v1073_v38 }
 0x25c   : > { %v1034_v21 = vor.u32 4788187, %v1033_v27  ;;  %v1079_v48 = vshll.u32 %v2432_v57, %v1073_v38  ;;  %v1037_v47 = vcvt.s32.f32 %v1030_v33  ;;  %vm1220_vm10 = vc.u32 %v2951_v32, %v2943_v51 }
 0x25d   : > { %v1077_v40 = vshrl.u32 %v2432_v57, %v1074_v56  ;;  %v1082_v63 = vshll.u32 %v2433_v61, %v1073_v38  ;;  %vm2013_vm11 = vcmp.lt.s32.totalorder %v2012_v62, 0  ;;  %v1222_v11 = vsel %vm1220_vm10, %v1221_v36, %v2944_v39 }
 0x25e   : > { %v1035_v10 = vand.u32 2147483647, %v1034_v21  ;;  %v1080_v15 = vshrl.u32 %v2433_v61, %v1074_v56  ;;  %v922_v34 = vsel %vm2013_vm11, 0, %v2012_v62  ;;  %v1223_v37 = vadd.s32 %v1222_v11, %v1218_v19 }
 0x25f   : > { %v1075_v5 = vshrl.u32 %v2431_v55, %v1074_v56  ;;  %v1083_v60 = vshrl.u32 %v2434_v0, %v1074_v56  ;;  %v923_v42 = vsub.s32 32, %v922_v34  ;;  %v927_v8 = vsub.s32 4294967266, %v922_v34 }
 0x260   : > { %v1038_v35 = vmul.f32 %v1037_v47, %v1035_v10  ;;  %v1078_v45 = vor.u32 %v1077_v40, %v1076_v53  ;;  %v924_v17 = vshll.u32 %v2932_v12, %v922_v34  ;;  %v1224_v18 = vadd.s32 536870912, %v1223_v37 }
 0x261   : > { %v1081_v44 = vor.u32 %v1080_v15, %v1079_v48  ;;  %v1085_v2 = vshll.u32 %v2434_v0, %v1073_v38  ;;  %v925_v59 = vshrl.u32 %v907_v23, %v923_v42  ;;  %v928_v46 = vadd.s32 127, %v927_v8 }
 0x262   : > { %v1039_v24 = vxor.u32 2147483648, %v1038_v35  ;;  %v1086_v41 = vshrl.u32 %v2435_v3, %v1074_v56  ;;  %v2980_v28 = vshrl.u32 %v1224_v18, 30  ;;  %v1084_v30 = vor.u32 %v1083_v60, %v1082_v63 }
 0x263   : > { %v1088_v39 = vshll.u32 %v2435_v3, %v1073_v38  ;;  %v1089_v20 = vshrl.u32 %v2436_v6, %v1074_v56  ;;  %v926_v12 = vor.u32 %v925_v59, %v924_v17  ;;  %v929_v52 = vshll.u32 %v928_v46, 23 }
 0x264   : > { %v1040_v50 = vsel %vm957_vm8, %v1039_v24, %v1038_v35  ;;  %v1087_v54 = vor.u32 %v1086_v41, %v1085_v2  ;;  %v1226_v33 = vshll.u32 %v2980_v28, 30  ;;  %vm1091_vm12 = vcmp.lt.s32.totalorder %v2959_v31, 1 }
 0x265   : > { %v1043_v43 = vsel %vm2963_vm9, %v2798_v4, %v1040_v50  ;;  %v1090_v27 = vor.u32 %v1089_v20, %v1088_v39  ;;  %v930_v23 = vor.u32 4788187, %v929_v52  ;;  %v933_v38 = vcvt.s32.f32 %v926_v12 }
 0x266   : > { %2358 = vcosq.f32 %v1043_v43  ;;  %vm1092_vm13 = vcmp.lt.s32.totalorder %v2959_v31, 2  ;;  %v2992_v49 = vsub.s32 %v1223_v37, %v1226_v33  ;;  %vm1093_vm14 = vcmp.lt.s32.totalorder %v2959_v31, 3 }
 0x267   : > { %2360 = vsinq.f32 %v1043_v43  ;;  %vm1094_vm15 = vcmp.lt.s32.totalorder %v2959_v31, 4  ;;  %v931_v19 = vand.u32 2147483647, %v930_v23  ;;  %v1099_v56 = vsel %vm1091_vm12, %v1078_v45, %v1081_v44 }
 0x268   : > { %v1096_v36 = vsel %vm1094_vm15, %v1084_v30, 2102212464  ;;  %v1100_v21 = vsel %vm1094_vm15, %v1087_v54, 920167782  ;;  %v1229_v62 = vsub.s32 0, %v2992_v49  ;;  %v1095_v53 = vsel %vm1091_vm12, %v1075_v5, %v1078_v45 }
 0x269   : > { %v1101_v48 = vsel %vm1093_vm14, %v1084_v30, %v1100_v21  ;;  %v1103_v47 = vsel %vm1091_vm12, %v1081_v44, %v1084_v30  ;;  %v934_v40 = vmul.f32 %v933_v38, %v931_v19  ;;  %v1097_v63 = vsel %vm1093_vm14, %v1081_v44, %v1096_v36 }
 0x26a   : > { %v1102_v10 = vsel %vm1092_vm13, %v1099_v56, %v1101_v48  ;;  %v1104_v11 = vsel %vm1094_vm15, %v1090_v27, 1326507024  ;;  %v2023_v15 = vmin.u32 %v1229_v62, %v2992_v49  ;;  %vm853_vm0 = vcmp.lt.s32.totalorder %v2802_v7, 0 }
 0x26b   : > { %v1105_v34 = vsel %vm1093_vm14, %v1087_v54, %v1104_v11  ;;  %v3007_v37 = vmul.u32.u64.low %v2906_v25, %v1102_v10  ;;  %v3008_v60 = vmul.u32.u64.high %v2906_v25, %v1102_v10, %v3007_v37  ;;  %v935_v5 = vxor.u32 2147483648, %v934_v40 }
 0x26c   : > { %v1106_v35 = vsel %vm1092_vm13, %v1103_v47, %v1105_v34  ;;  %v937_v42 = vsub.s32 4, %v2926_v1  ;;  %v1231_v8 = vclz %v2023_v15  ;;  %v1098_v45 = vsel %vm1092_vm13, %v1095_v53, %v1097_v63 }
 0x26d   : > { %v3018_v17 = vmul.u32.u64.low %v2906_v25, %v1106_v35  ;;  %v3019_v18 = vmul.u32.u64.high %v2906_v25, %v1106_v35, %v3018_v17  ;;  %v936_v44 = vsel %vm853_vm0, %v935_v5, %v934_v40  ;;  %vm3025_vm1 = vcmp.le.f32.partialorder %v851_v9, 0.7853982 }
 0x26e   : > { %v2024_v24 = vadd.s32 4294967294, %v1231_v8  ;;  %v1117_v59 = vadd.s32 1, %v3008_v60  ;;  %v939_v31 = vsel %vm3025_vm1, %v2802_v7, %v936_v44  ;;  %v1042_v46 = vsel %vm957_vm8, %v1041_v26, %v2889_v14 }
 0x26f   : > { %v1114_v41 = vmul.u32 %v2906_v25, %v1098_v45  ;;  %2362 = vcosq.f32 %v939_v31  ;;  %vm1116_vm3 = vc.u32 %v3019_v18, %v3007_v37  ;;  %v938_v9 = vsel %vm853_vm0, %v937_v42, %v2926_v1 }
 0x270   : > { %vm2025_vm2 = vcmp.lt.s32.totalorder %v2024_v24, 0  ;;  %2364 = vsinq.f32 %v939_v31  ;;  %v1118_v39 = vsel %vm1116_vm3, %v1117_v59, %v3008_v60  ;;  %v1044_v20 = vsel %vm2963_vm9, 0, %v1042_v46 }
 0x271   : > { %v1234_v30 = vsel %vm2025_vm2, 0, %v2024_v24  ;;  %v1119_v26 = vadd.s32 %v1118_v39, %v1114_v41  ;;  %v940_v52 = vsel %vm3025_vm1, 0, %v938_v9  ;;  %v1048_v33 = vadd.s32 3, %v1044_v20 }
 0x272   : > { %v1239_v14 = vsub.s32 4294967266, %v1234_v30  ;;  %v1235_v12 = vsub.s32 32, %v1234_v30  ;;  %v1219_v1 = vadd.s32 %v2943_v51, %v2951_v32  ;;  %v944_v38 = vadd.s32 3, %v940_v52 }
 0x273   : > { %v2359_v50 = vpop.eup %2358  ;;  %v1120_v43 = vadd.s32 536870912, %v1119_v26  ;;  %v1049_v36 = vand.u32 3, %v1048_v33  ;;  %v1236_v56 = vshll.u32 %v2992_v49, %v1234_v30  ;;  %vm943_vm10 = vweird.f32 %v2802_v7 }
 0x274   : > { %v2361_v25 = vpop.eup %2360  ;;  %v1240_v54 = vadd.s32 127, %v1239_v14  ;;  %v1237_v58 = vshrl.u32 %v1219_v1, %v1235_v12  ;;  %v1055_v53 = vxor.u32 2147483648, %v2359_v50  ;;  %v945_v47 = vand.u32 3, %v944_v38 }
 0x275   : > { %v3051_v23 = vshrl.u32 %v1120_v43, 30  ;;  %v1052_v62 = vxor.u32 2147483648, %v2361_v25  ;;  %vm1051_vm4 = vcmp.eq.s32.totalorder %v1049_v36, 0  ;;  %vm1054_vm5 = vcmp.eq.s32.totalorder %v1049_v36, 2 }
 0x276   : > { %v1241_v27 = vshll.u32 %v1240_v54, 23  ;;  %v1238_v40 = vor.u32 %v1237_v58, %v1236_v56  ;;  %v1056_v34 = vsel %vm1054_vm5, %v1055_v53, %v2361_v25  ;;  %vm950_vm6 = vcmp.eq.s32.totalorder %v945_v47, 2 }
 0x277   : > { %v1122_v19 = vshll.u32 %v3051_v23, 30  ;;  %v1053_v15 = vsel %vm1051_vm4, %v2359_v50, %v1052_v62  ;;  %vm947_vm7 = vcmp.eq.s32.totalorder %v945_v47, 0  ;;  %vm1050_vm8 = vcmp.lt.s32.totalorder %v1049_v36, 2 }
 0x278   : > { %v1242_v21 = vor.u32 4788187, %v1241_v27  ;;  %v1245_v35 = vcvt.s32.f32 %v1238_v40  ;;  %vm946_vm9 = vcmp.lt.s32.totalorder %v945_v47, 2  ;;  %v1057_v45 = vsel %vm1050_vm8, %v1053_v15, %v1056_v34 }
 0x279   : > { %v1123_v48 = vsub.s32 %v1119_v26, %v1122_v19  ;;  %vm1047_vm11 = vweird.f32 %v2798_v4  ;;  %v1115_v41 = vadd.s32 %v3007_v37, %v3019_v18  ;;  %vm1165_vm13 = vcmp.lt.s32.totalorder %v2808_v13, 0 }
 0x27a   : > { %v1243_v32 = vand.u32 2147483647, %v1242_v21  ;;  %v1058_v59 = vsel %vm1047_vm11, nan, %v1057_v45  ;;  %vm3064_vm14 = vcmp.le.f32.partialorder %v1163_v16, 0.7853982  ;;  %v1249_v54 = vsub.s32 4, %v2980_v28 }
 0x27b   : > { %v1125_v10 = vsub.s32 0, %v1123_v48  ;;  %vm1061_vm15 = vcmp.lt.s32.totalorder %v2810_v29, 0  ;;  %v1145_v16 = vsub.s32 4, %v3051_v23  ;;  %vm1060_vm0 = vcmp.le.f32.partialorder %v1059_v22, 0.7853982 }
 0x27c   : > { %v2363_v63 = vpop.eup %2362  ;;  %v1246_v17 = vmul.f32 %v1245_v35, %v1243_v32  ;;  %v1250_v27 = vsel %vm1165_vm13, %v1249_v54, %v2980_v28  ;;  %vm1255_vm8 = vweird.f32 %v2808_v13  ;;  %v1809_v35 = vld [vmem:[#allocation2 + $0x178] sm:$0xff] }
 0x27d   : > { %v2365_v51 = vpop.eup %2364  ;;  %v951_v11 = vxor.u32 2147483648, %v2363_v63  ;;  %v2019_v60 = vmin.u32 %v1125_v10, %v1123_v48  ;;  %v1146_v38 = vsel %vm1061_vm15, %v1145_v16, %v3051_v23  ;;  %v1252_v58 = vsel %vm3064_vm14, 0, %v1250_v27  ;;  %2197 = vmatprep.subr.mxu0 %v1809_v35  ;;  %2235 = vmatprep.subr.mxu1 %v1809_v35  ;;  %v1799_v16 = vld [vmem:[#allocation2 + $0x128] sm:$0xff] }
 0x27e   : > { %v948_v5 = vxor.u32 2147483648, %v2365_v51  ;;  %v1247_v31 = vxor.u32 2147483648, %v1246_v17  ;;  %v1148_v19 = vsel %vm1060_vm0, 0, %v1146_v38  ;;  %v1256_v36 = vadd.s32 3, %v1252_v58  ;;  %2251 = vmatpush3.msra.mxu1 %v1809_v35 }
 0x27f   : > { %v952_v49 = vsel %vm950_vm6, %v951_v11, %v2365_v51  ;;  %v1127_v42 = vclz %v2019_v60  ;;  %v1152_v62 = vadd.s32 3, %v1148_v19  ;;  %v1798_v19 = vld [vmem:[#allocation2 + $0x120] sm:$0xff] }
 0x280   : > { %v949_v8 = vsel %vm947_vm7, %v2363_v63, %v948_v5  ;;  %v1248_v50 = vsel %vm1165_vm13, %v1247_v31, %v1246_v17  ;;  %v1257_v53 = vand.u32 3, %v1256_v36  ;;  %vm1151_vm7 = vweird.f32 %v2810_v29  ;;  %v1805_v17 = vld [vmem:[#allocation2 + $0x158] sm:$0xff]  ;;  %v1804_v31 = vld [vmem:[#allocation2 + $0x150] sm:$0xff] }
 0x281   : > { %v953_v44 = vsel %vm946_vm9, %v949_v8, %v952_v49  ;;  %v2020_v2 = vadd.s32 4294967294, %v1127_v42  ;;  %v1251_v37 = vsel %vm3064_vm14, %v2808_v13, %v1248_v50  ;;  %v1153_v47 = vand.u32 3, %v1152_v62  ;;  %v1808_v49 = vld [vmem:[#allocation2 + $0x170] sm:$0xff]  ;;  %v1807_v42 = vld [vmem:[#allocation2 + $0x168] sm:$0xff]  ;;  %v3088_v8 = vld [vmem:[%s3385_s3 + $0x2] ss:$0 sm:$0xff] }
 0x282   : > { %v954_v24 = vsel %vm943_vm10, nan, %v953_v44  ;;  %2366 = vcosq.f32 %v1251_v37  ;;  %vm1259_vm1 = vcmp.eq.s32.totalorder %v1257_v53, 0  ;;  %vm1262_vm2 = vcmp.eq.s32.totalorder %v1257_v53, 2  ;;  %2236 = vmatprep.subr.mxu1 %v1808_v49 }
 0x283   : > { %2191 = vmatprep.mubr.f32.mxu0 %v954_v24  ;;  %vm2021_vm12 = vcmp.lt.s32.totalorder %v2020_v2, 0  ;;  %2368 = vsinq.f32 %v1251_v37  ;;  %vm1158_vm3 = vcmp.eq.s32.totalorder %v1153_v47, 2  ;;  %vm1155_vm4 = vcmp.eq.s32.totalorder %v1153_v47, 0  ;;  %2252 = vmatpush3.msra.mxu1 %v1808_v49 }
 0x284   : > { %2192 = vmatmul.mubr.f32.vlgmr.msra.gmra.mxu0 %v1058_v59  ;;  %v1130_v46 = vsel %vm2021_vm12, 0, %v2020_v2  ;;  %vm1258_vm5 = vcmp.lt.s32.totalorder %v1257_v53, 2  ;;  %vm1154_vm6 = vcmp.lt.s32.totalorder %v1153_v47, 2  ;;  %2237 = vmatprep.subr.mxu1 %v1807_v42 }
 0x285   : > { %v1131_v9 = vsub.s32 32, %v1130_v46  ;;  %v1135_v30 = vsub.s32 4294967266, %v1130_v46  ;;  %v1132_v39 = vshll.u32 %v1123_v48, %v1130_v46  ;;  %2198 = vmatpush3.msra.mxu0 %v1809_v35  ;;  %2253 = vmatpush3.msra.mxu1 %v1807_v42 }
 0x286   : > { %2199 = vmatprep.subr.mxu0 %v1808_v49 }
 0x287   : > { %v1133_v7 = vshrl.u32 %v1115_v41, %v1131_v9  ;;  %v1136_v20 = vadd.s32 127, %v1135_v30  ;;  %2200 = vmatpush3.msra.mxu0 %v1808_v49  ;;  %v1803_v41 = vld [vmem:[#allocation2 + $0x148] sm:$0xff] }
 0x288   : > { %2201 = vmatprep.subr.mxu0 %v1807_v42 }
 0x289   : > { %v1134_v4 = vor.u32 %v1133_v7, %v1132_v39  ;;  %v1137_v14 = vshll.u32 %v1136_v20, 23  ;;  %2202 = vmatpush3.msra.mxu0 %v1807_v42  ;;  %v1802_v20 = vld [vmem:[#allocation2 + $0x140] sm:$0xff]  ;;  %v1795_v42 = vld [vmem:[#allocation2 + $0x108] sm:$0xff] }
 0x28b   : > { %v1138_v25 = vor.u32 4788187, %v1137_v14  ;;  %v1141_v12 = vcvt.s32.f32 %v1134_v4  ;;  %v1801_v14 = vld [vmem:[#allocation2 + $0x138] sm:$0xff] }
 0x28d   : > { %v1139_v18 = vand.u32 2147483647, %v1138_v25 }
 0x28f   : > { %v1142_v52 = vmul.f32 %v1141_v12, %v1139_v18  ;;  %v2367_v56 = vpop.eup %2366  ;;  %v1800_v18 = vld [vmem:[#allocation2 + $0x130] sm:$0xff] }
 0x290   : > { %v2369_v21 = vpop.eup %2368  ;;  %v1263_v48 = vxor.u32 2147483648, %v2367_v56 }
 0x291   : > { %v1143_v43 = vxor.u32 2147483648, %v1142_v52  ;;  %v1260_v22 = vxor.u32 2147483648, %v2369_v21 }
 0x292   : > { %v1264_v23 = vsel %vm1262_vm2, %v1263_v48, %v2369_v21  ;;  %v1797_v48 = vld [vmem:[#allocation2 + $0x118] sm:$0xff] }
 0x293   : > { %v1144_v33 = vsel %vm1061_vm15, %v1143_v43, %v1142_v52  ;;  %v1261_v10 = vsel %vm1259_vm1, %v2367_v56, %v1260_v22 }
 0x294   : > { %v1147_v1 = vsel %vm1060_vm0, %v2810_v29, %v1144_v33  ;;  %v1265_v15 = vsel %vm1258_vm5, %v1261_v10, %v1264_v23  ;;  %v1806_v29 = vld [vmem:[#allocation2 + $0x160] sm:$0xff] }
 0x295   : > { %2370 = vcosq.f32 %v1147_v1  ;;  %v1266_v5 = vsel %vm1255_vm8, nan, %v1265_v15  ;;  %2203 = vmatprep.subr.mxu0 %v1806_v29  ;;  %2238 = vmatprep.subr.mxu1 %v1806_v29 }
 0x296   : > { %2372 = vsinq.f32 %v1147_v1  ;;  %2204 = vmatpush3.msra.mxu0 %v1806_v29  ;;  %2254 = vmatpush3.msra.mxu1 %v1806_v29 }
 0x297   : > { %2205 = vmatprep.subr.mxu0 %v1805_v17  ;;  %2239 = vmatprep.subr.mxu1 %v1805_v17 }
 0x298   : > { %2206 = vmatpush3.msra.mxu0 %v1805_v17  ;;  %2255 = vmatpush3.msra.mxu1 %v1805_v17 }
 0x299   : > { %2207 = vmatprep.subr.mxu0 %v1804_v31  ;;  %2240 = vmatprep.subr.mxu1 %v1804_v31 }
 0x29a   : > { %2208 = vmatpush3.msra.mxu0 %v1804_v31  ;;  %2256 = vmatpush3.msra.mxu1 %v1804_v31 }
 0x29b   : > { %2209 = vmatprep.subr.mxu0 %v1803_v41  ;;  %2241 = vmatprep.subr.mxu1 %v1803_v41 }
 0x29c   : > { %2210 = vmatpush3.msra.mxu0 %v1803_v41  ;;  %2257 = vmatpush3.msra.mxu1 %v1803_v41  ;;  %v1794_v41 = vld [vmem:[#allocation2 + $0x100] sm:$0xff] }
 0x29d   : > { %2211 = vmatprep.subr.mxu0 %v1802_v20  ;;  %2242 = vmatprep.subr.mxu1 %v1802_v20 }
 0x29e   : > { %2212 = vmatpush3.msra.mxu0 %v1802_v20  ;;  %2258 = vmatpush3.msra.mxu1 %v1802_v20 }
 0x29f   : > { %2213 = vmatprep.subr.mxu0 %v1801_v14  ;;  %2243 = vmatprep.subr.mxu1 %v1801_v14 }
 0x2a0   : > { %2214 = vmatpush3.msra.mxu0 %v1801_v14  ;;  %2259 = vmatpush3.msra.mxu1 %v1801_v14 }
 0x2a1   : > { %2215 = vmatprep.subr.mxu0 %v1800_v18  ;;  %2244 = vmatprep.subr.mxu1 %v1800_v18 }
 0x2a2   : > { %v2371_v40 = vpop.eup %2370  ;;  %2216 = vmatpush3.msra.mxu0 %v1800_v18  ;;  %2260 = vmatpush3.msra.mxu1 %v1800_v18 }
 0x2a3   : > { %v2373_v28 = vpop.eup %2372  ;;  %v1159_v63 = vxor.u32 2147483648, %v2371_v40  ;;  %2217 = vmatprep.subr.mxu0 %v1799_v16  ;;  %2245 = vmatprep.subr.mxu1 %v1799_v16 }
 0x2a4   : > { %v1156_v51 = vxor.u32 2147483648, %v2373_v28  ;;  %2218 = vmatpush3.msra.mxu0 %v1799_v16  ;;  %2261 = vmatpush3.msra.mxu1 %v1799_v16 }
 0x2a5   : > { %v1160_v32 = vsel %vm1158_vm3, %v1159_v63, %v2373_v28  ;;  %2219 = vmatprep.subr.mxu0 %v1798_v19  ;;  %2246 = vmatprep.subr.mxu1 %v1798_v19 }
 0x2a6   : > { %v1157_v11 = vsel %vm1155_vm4, %v2371_v40, %v1156_v51  ;;  %2220 = vmatpush3.msra.mxu0 %v1798_v19  ;;  %2262 = vmatpush3.msra.mxu1 %v1798_v19 }
 0x2a7   : > { %v1161_v34 = vsel %vm1154_vm6, %v1157_v11, %v1160_v32  ;;  %v1796_v32 = vld [vmem:[#allocation2 + $0x110] sm:$0xff]  ;;  %2221 = vmatprep.subr.mxu0 %v1797_v48  ;;  %2247 = vmatprep.subr.mxu1 %v1797_v48 }
 0x2a8   : > { %v1162_v60 = vsel %vm1151_vm7, nan, %v1161_v34  ;;  %2222 = vmatpush3.msra.mxu0 %v1797_v48  ;;  %2263 = vmatpush3.msra.mxu1 %v1797_v48 }
 0x2a9   : > { %2194 = vmatprep.mubr.f32.mxu0 %v1162_v60  ;;  %2223 = vmatprep.subr.mxu0 %v1796_v32 }
 0x2aa   : > { %2195 = vmatmul.mubr.f32.gmra.mxu0 %v1266_v5  ;;  %2248 = vmatprep.subr.mxu1 %v1796_v32 }
 0x2ab   : > { %2224 = vmatpush3.msra.mxu0 %v1796_v32  ;;  %2264 = vmatpush3.msra.mxu1 %v1796_v32 }
 0x2ac   : > { %2225 = vmatprep.subr.mxu0 %v1795_v42  ;;  %2249 = vmatprep.subr.mxu1 %v1795_v42 }
 0x2ad   : > { %2226 = vmatpush3.msra.mxu0 %v1795_v42  ;;  %2265 = vmatpush3.msra.mxu1 %v1795_v42 }
 0x2ae   : > { %2227 = vmatprep.subr.mxu0 %v1794_v41  ;;  %2250 = vmatprep.subr.mxu1 %v1794_v41 }
 0x2af   : > { %2228 = vmatpush3.msra.mxu0 %v1794_v41  ;;  %2266 = vmatpush3.msra.mxu1 %v1794_v41 }
 0x344   : > { %v2193_v13 = vpop.f32.mrf.mxu0 }
 0x345   : > { %v3091_v45 = vadd.f32 %v2193_v13, %v3088_v8 }
 0x346   : > { %v1358_v44 = vpop.f32.mrf.mxu0 }
 0x347   : > { %v1481_v2 = vand.u32 2147483647, %v3091_v45  ;;  %v1484_v24 = vand.u32 2139095040, %v3091_v45  ;;  %v3096_v59 = vadd.f32 %v3088_v8, %v1358_v44  ;;  %vm1483_vm5 = vcmp.lt.s32.totalorder %v3091_v45, 0 }
 0x349   : > { %v1485_v46 = vshrl.u32 %v1484_v24, 23  ;;  %v1488_v9 = vand.u32 8388607, %v1481_v2  ;;  %v1380_v30 = vand.u32 2139095040, %v3096_v59  ;;  %v1377_v7 = vand.u32 2147483647, %v3096_v59 }
 0x34b   : > { %v2032_v39 = vadd.s32 4294967169, %v1485_v46  ;;  %v1381_v50 = vshrl.u32 %v1380_v30, 23  ;;  %v1489_v26 = vor.u32 8388608, %v1488_v9  ;;  %v3104_v37 = vand.u32 8388607, %v1377_v7 }
 0x34d   : > { %v1491_v4 = vadd.s32 1, %v2032_v39  ;;  %v2028_v25 = vadd.s32 4294967169, %v1381_v50  ;;  %v3108_v33 = vshll.u32 %v1489_v26, 8  ;;  %v1385_v58 = vor.u32 8388608, %v3104_v37 }
 0x34f   : > { %vm1492_vm9 = vcmp.gt.s32.totalorder %v1491_v4, 0  ;;  %v1387_v52 = vadd.s32 1, %v2028_v25 }
 0x350   : > { %v1493_v12 = vsel %vm1492_vm9, %v1491_v4, 0 }
 0x351   : > { %v3106_v54 = vshrl.u32 %v1493_v12, 5  ;;  %v1495_v43 = vand.u32 31, %v1493_v12  ;;  %vm1388_vm10 = vcmp.gt.s32.totalorder %v1387_v52, 0 }
 0x352   : > { %v1389_v51 = vsel %vm1388_vm10, %v1387_v52, 0  ;;  %vm3223_vm10 = vcmp.le.f32.partialorder %v1481_v2, 0.7853982 }
 0x353   : > { %v1496_v1 = vsub.s32 32, %v1495_v43  ;;  %v1498_v27 = vshll.u32 %v2431_v55, %v1495_v43  ;;  %v1501_v38 = vshll.u32 %v2432_v57, %v1495_v43  ;;  %v1504_v36 = vshll.u32 %v2433_v61, %v1495_v43 }
 0x354   : > { %v1507_v56 = vshll.u32 %v2434_v0, %v1495_v43  ;;  %v1510_v21 = vshll.u32 %v2435_v3, %v1495_v43  ;;  %vm1513_vm11 = vcmp.lt.s32.totalorder %v3106_v54, 1  ;;  %vm1515_vm12 = vcmp.lt.s32.totalorder %v3106_v54, 3 }
 0x355   : > { %v1499_v62 = vshrl.u32 %v2432_v57, %v1496_v1  ;;  %v1502_v53 = vshrl.u32 %v2433_v61, %v1496_v1  ;;  %v1505_v22 = vshrl.u32 %v2434_v0, %v1496_v1  ;;  %v1497_v47 = vshrl.u32 %v2431_v55, %v1496_v1 }
 0x356   : > { %v1508_v40 = vshrl.u32 %v2435_v3, %v1496_v1  ;;  %v1511_v28 = vshrl.u32 %v2436_v6, %v1496_v1  ;;  %vm1516_vm13 = vcmp.lt.s32.totalorder %v3106_v54, 4  ;;  %v1391_v34 = vand.u32 31, %v1389_v51 }
 0x357   : > { %v1500_v63 = vor.u32 %v1499_v62, %v1498_v27  ;;  %v1503_v10 = vor.u32 %v1502_v53, %v1501_v38  ;;  %v1506_v23 = vor.u32 %v1505_v22, %v1504_v36  ;;  %vm1514_vm14 = vcmp.lt.s32.totalorder %v3106_v54, 2 }
 0x358   : > { %v1509_v11 = vor.u32 %v1508_v40, %v1507_v56  ;;  %v1512_v15 = vor.u32 %v1511_v28, %v1510_v21  ;;  %v1392_v44 = vsub.s32 32, %v1391_v34  ;;  %v3139_v46 = vshrl.u32 %v1389_v51, 5 }
 0x359   : > { %v1517_v60 = vsel %vm1513_vm11, %v1497_v47, %v1500_v63  ;;  %v1518_v5 = vsel %vm1516_vm13, %v1506_v23, 2102212464  ;;  %v1521_v35 = vsel %vm1513_vm11, %v1500_v63, %v1503_v10  ;;  %v1525_v49 = vsel %vm1513_vm11, %v1503_v10, %v1506_v23 }
 0x35a   : > { %v1519_v29 = vsel %vm1515_vm12, %v1503_v10, %v1518_v5  ;;  %v1522_v13 = vsel %vm1516_vm13, %v1509_v11, 920167782  ;;  %v1526_v17 = vsel %vm1516_vm13, %v1512_v15, 1326507024  ;;  %v1394_v20 = vshll.u32 %v2431_v55, %v1391_v34 }
 0x35b   : > { %v1523_v24 = vsel %vm1515_vm12, %v1506_v23, %v1522_v13  ;;  %v1527_v31 = vsel %vm1515_vm12, %v1509_v11, %v1526_v17  ;;  %v1520_v9 = vsel %vm1514_vm14, %v1517_v60, %v1519_v29  ;;  %v1395_v25 = vshrl.u32 %v2432_v57, %v1392_v44 }
 0x35c   : > { %v1524_v30 = vsel %vm1514_vm14, %v1521_v35, %v1523_v24  ;;  %v1528_v39 = vsel %vm1514_vm14, %v1525_v49, %v1527_v31  ;;  %v1397_v18 = vshll.u32 %v2432_v57, %v1391_v34  ;;  %v1398_v12 = vshrl.u32 %v2433_v61, %v1392_v44 }
 0x35d   : > { %v3143_v50 = vmul.u32.u64.low %v3108_v33, %v1528_v39  ;;  %v3144_v4 = vmul.u32.u64.high %v3108_v33, %v1528_v39, %v3143_v50  ;;  %v3147_v14 = vmul.u32.u64.low %v3108_v33, %v1524_v30  ;;  %v3148_v26 = vmul.u32.u64.high %v3108_v33, %v1524_v30, %v3147_v14 }
 0x35e   : > { %v1400_v52 = vshll.u32 %v2433_v61, %v1391_v34  ;;  %v1401_v54 = vshrl.u32 %v2434_v0, %v1392_v44  ;;  %v1403_v43 = vshll.u32 %v2434_v0, %v1391_v34  ;;  %v1404_v16 = vshrl.u32 %v2435_v3, %v1392_v44 }
 0x35f   : > { %v1406_v1 = vshll.u32 %v2435_v3, %v1391_v34  ;;  %v1396_v27 = vor.u32 %v1395_v25, %v1394_v20  ;;  %v1399_v38 = vor.u32 %v1398_v12, %v1397_v18  ;;  %v1407_v19 = vshrl.u32 %v2436_v6, %v1392_v44 }
 0x360   : > { %v1425_v36 = vshll.u32 %v1385_v58, 8  ;;  %v1536_v56 = vmul.u32 %v3108_v33, %v1520_v9  ;;  %vm1538_vm15 = vc.u32 %v3144_v4, %v3147_v14  ;;  %v1539_v21 = vadd.s32 1, %v3148_v26 }
 0x361   : > { %v1402_v62 = vor.u32 %v1401_v54, %v1400_v52  ;;  %v1393_v53 = vshrl.u32 %v2431_v55, %v1392_v44  ;;  %v1405_v22 = vor.u32 %v1404_v16, %v1403_v43  ;;  %v1408_v48 = vor.u32 %v1407_v19, %v1406_v1 }
 0x362   : > { %vm1409_vm0 = vcmp.lt.s32.totalorder %v3139_v46, 1  ;;  %v1540_v37 = vsel %vm1538_vm15, %v1539_v21, %v3148_v26  ;;  %vm1411_vm1 = vcmp.lt.s32.totalorder %v3139_v46, 3  ;;  %vm1412_vm2 = vcmp.lt.s32.totalorder %v3139_v46, 4 }
 0x363   : > { %v1417_v33 = vsel %vm1409_vm0, %v1396_v27, %v1399_v38  ;;  %v1541_v58 = vadd.s32 %v1540_v37, %v1536_v56  ;;  %v1414_v47 = vsel %vm1412_vm2, %v1402_v62, 2102212464  ;;  %v1418_v40 = vsel %vm1412_vm2, %v1405_v22, 920167782 }
 0x364   : > { %v1421_v28 = vsel %vm1409_vm0, %v1399_v38, %v1402_v62  ;;  %vm1410_vm3 = vcmp.lt.s32.totalorder %v3139_v46, 2  ;;  %v1413_v63 = vsel %vm1409_vm0, %v1393_v53, %v1396_v27  ;;  %v1419_v10 = vsel %vm1411_vm1, %v1402_v62, %v1418_v40 }
 0x365   : > { %v1422_v23 = vsel %vm1412_vm2, %v1408_v48, 1326507024  ;;  %v1542_v51 = vadd.s32 536870912, %v1541_v58  ;;  %v1415_v32 = vsel %vm1411_vm1, %v1399_v38, %v1414_v47  ;;  %v1420_v11 = vsel %vm1410_vm3, %v1417_v33, %v1419_v10 }
 0x366   : > { %v1423_v15 = vsel %vm1411_vm1, %v1405_v22, %v1422_v23  ;;  %v3172_v60 = vmul.u32.u64.low %v1425_v36, %v1420_v11  ;;  %v3173_v5 = vmul.u32.u64.high %v1425_v36, %v1420_v11, %v3172_v60  ;;  %v1416_v29 = vsel %vm1410_vm3, %v1413_v63, %v1415_v32 }
 0x367   : > { %v1424_v34 = vsel %vm1410_vm3, %v1421_v28, %v1423_v15  ;;  %v1543_v35 = vshrl.u32 %v1542_v51, 30  ;;  %v1432_v31 = vmul.u32 %v1425_v36, %v1416_v29  ;;  %v1537_v21 = vadd.s32 %v3147_v14, %v3144_v4 }
 0x368   : > { %v3175_v49 = vmul.u32.u64.low %v1425_v36, %v1424_v34  ;;  %v3176_v42 = vmul.u32.u64.high %v1425_v36, %v1424_v34, %v3175_v49  ;;  %v1435_v17 = vadd.s32 1, %v3173_v5  ;;  %vm1379_vm12 = vcmp.lt.s32.totalorder %v3096_v59, 0 }
 0x369   : > { %v1544_v13 = vshll.u32 %v1543_v35, 30  ;;  %vm3285_vm0 = vcmp.le.f32.partialorder %v1377_v7, 0.7853982 }
 0x36a   : > { %v2196_v44 = vpop.f32.mrf.mxu0  ;;  %vm1434_vm4 = vc.u32 %v3176_v42, %v3172_v60  ;;  %v1433_v28 = vadd.s32 %v3172_v60, %v3176_v42 }
 0x36b   : > { %v1545_v24 = vsub.s32 %v1541_v58, %v1544_v13  ;;  %v3181_v46 = vadd.f32 %v2196_v44, %v3088_v8  ;;  %v1436_v41 = vsel %vm1434_vm4, %v1435_v17, %v3173_v5 }
 0x36c   : > { %v1368_v9 = vpop.f32.mrf.mxu0  ;;  %v1437_v39 = vadd.s32 %v1436_v41, %v1432_v31 }
 0x36d   : > { %v1547_v30 = vsub.s32 0, %v1545_v24  ;;  %v1689_v20 = vand.u32 2147483647, %v3181_v46  ;;  %v1692_v50 = vand.u32 2139095040, %v3181_v46  ;;  %v3187_v26 = vadd.f32 %v3088_v8, %v1368_v9 }
 0x36e   : > { %v1438_v18 = vadd.s32 536870912, %v1437_v39  ;;  %v1567_v8 = vsub.s32 4, %v1543_v35 }
 0x36f   : > { %v2033_v25 = vmin.u32 %v1547_v30, %v1545_v24  ;;  %v1693_v12 = vshrl.u32 %v1692_v50, 23  ;;  %v1588_v52 = vand.u32 2139095040, %v3187_v26  ;;  %v1696_v1 = vand.u32 8388607, %v1689_v20 }
 0x370   : > { %v3190_v43 = vshrl.u32 %v1438_v18, 30  ;;  %v1585_v48 = vand.u32 2147483647, %v3187_v26  ;;  %v3205_v4 = vsel %vm1483_vm5, %v1567_v8, %v1543_v35 }
 0x371   : > { %v1549_v54 = vclz %v2033_v25  ;;  %v2040_v16 = vadd.s32 4294967169, %v1693_v12  ;;  %v1589_v27 = vshrl.u32 %v1588_v52, 23  ;;  %v1697_v22 = vor.u32 8388608, %v1696_v1 }
 0x372   : > { %v1440_v19 = vshll.u32 %v3190_v43, 30  ;;  %v3214_v15 = vand.u32 8388607, %v1585_v48  ;;  %v1463_v34 = vsub.s32 4, %v3190_v43 }
 0x373   : > { %v2034_v38 = vadd.s32 4294967294, %v1549_v54  ;;  %v1699_v36 = vadd.s32 1, %v2040_v16  ;;  %v2036_v56 = vadd.s32 4294967169, %v1589_v27  ;;  %v3210_v11 = vshll.u32 %v1697_v22, 8 }
 0x374   : > { %v3198_v62 = vsub.s32 %v1437_v39, %v1440_v19 }
 0x375   : > { %vm2035_vm6 = vcmp.lt.s32.totalorder %v2034_v38, 0  ;;  %vm1700_vm7 = vcmp.gt.s32.totalorder %v1699_v36, 0  ;;  %v1595_v47 = vadd.s32 1, %v2036_v56 }
 0x376   : > { %v1552_v53 = vsel %vm2035_vm6, 0, %v2034_v38  ;;  %v1443_v58 = vsub.s32 0, %v3198_v62  ;;  %v1701_v63 = vsel %vm1700_vm7, %v1699_v36, 0 }
 0x377   : > { %v1553_v37 = vsub.s32 32, %v1552_v53  ;;  %v1557_v33 = vsub.s32 4294967266, %v1552_v53  ;;  %v1554_v40 = vshll.u32 %v1545_v24, %v1552_v53  ;;  %v3208_v51 = vshrl.u32 %v1701_v63, 5 }
 0x378   : > { %v2029_v23 = vmin.u32 %v1443_v58, %v3198_v62  ;;  %v1703_v32 = vand.u32 31, %v1701_v63  ;;  %vm1596_vm8 = vcmp.gt.s32.totalorder %v1595_v47, 0 }
 0x379   : > { %v1555_v14 = vshrl.u32 %v1537_v21, %v1553_v37  ;;  %v1558_v10 = vadd.s32 127, %v1557_v33  ;;  %vm1721_vm9 = vcmp.lt.s32.totalorder %v3208_v51, 1  ;;  %vm1723_vm13 = vcmp.lt.s32.totalorder %v3208_v51, 3 }
 0x37a   : > { %v1445_v49 = vclz %v2029_v23  ;;  %v1704_v35 = vsub.s32 32, %v1703_v32  ;;  %v1706_v42 = vshll.u32 %v2431_v55, %v1703_v32  ;;  %v1709_v29 = vshll.u32 %v2432_v57, %v1703_v32 }
 0x37b   : > { %v1556_v60 = vor.u32 %v1555_v14, %v1554_v40  ;;  %v1559_v5 = vshll.u32 %v1558_v10, 23  ;;  %v1712_v24 = vshll.u32 %v2433_v61, %v1703_v32  ;;  %v1715_v39 = vshll.u32 %v2434_v0, %v1703_v32 }
 0x37c   : > { %v2030_v44 = vadd.s32 4294967294, %v1445_v49  ;;  %v1707_v41 = vshrl.u32 %v2432_v57, %v1704_v35  ;;  %v1710_v9 = vshrl.u32 %v2433_v61, %v1704_v35  ;;  %v1713_v30 = vshrl.u32 %v2434_v0, %v1704_v35 }
 0x37d   : > { %v1560_v13 = vor.u32 4788187, %v1559_v5  ;;  %v1563_v17 = vcvt.s32.f32 %v1556_v60  ;;  %v1705_v25 = vshrl.u32 %v2431_v55, %v1704_v35  ;;  %v1716_v18 = vshrl.u32 %v2435_v3, %v1704_v35 }
 0x37e   : > { %vm2031_vm11 = vcmp.lt.s32.totalorder %v2030_v44, 0  ;;  %v1708_v52 = vor.u32 %v1707_v41, %v1706_v42  ;;  %v1711_v2 = vor.u32 %v1710_v9, %v1709_v29  ;;  %v1714_v54 = vor.u32 %v1713_v30, %v1712_v24 }
 0x37f   : > { %v1561_v50 = vand.u32 2147483647, %v1560_v13  ;;  %v1448_v12 = vsel %vm2031_vm11, 0, %v2030_v44  ;;  %v1718_v38 = vshll.u32 %v2435_v3, %v1703_v32  ;;  %v1717_v36 = vor.u32 %v1716_v18, %v1715_v39 }
 0x380   : > { %v1449_v1 = vsub.s32 32, %v1448_v12  ;;  %v1453_v27 = vsub.s32 4294967266, %v1448_v12  ;;  %v1450_v19 = vshll.u32 %v3198_v62, %v1448_v12  ;;  %v1719_v56 = vshrl.u32 %v2436_v6, %v1704_v35 }
 0x381   : > { %v1564_v16 = vmul.f32 %v1563_v17, %v1561_v50  ;;  %vm1724_vm14 = vcmp.lt.s32.totalorder %v3208_v51, 4  ;;  %v1725_v37 = vsel %vm1721_vm9, %v1705_v25, %v1708_v52  ;;  %v1729_v62 = vsel %vm1721_vm9, %v1708_v52, %v1711_v2 }
 0x382   : > { %v1451_v21 = vshrl.u32 %v1433_v28, %v1449_v1  ;;  %v1454_v53 = vadd.s32 127, %v1453_v27  ;;  %v1720_v22 = vor.u32 %v1719_v56, %v1718_v38  ;;  %v1726_v33 = vsel %vm1724_vm14, %v1714_v54, 2102212464 }
 0x383   : > { %v1565_v8 = vxor.u32 2147483648, %v1564_v16  ;;  %v1727_v28 = vsel %vm1723_vm13, %v1711_v2, %v1726_v33  ;;  %vm1722_vm15 = vcmp.lt.s32.totalorder %v3208_v51, 2  ;;  %v1730_v14 = vsel %vm1724_vm14, %v1717_v36, 920167782 }
 0x384   : > { %v1452_v40 = vor.u32 %v1451_v21, %v1450_v19  ;;  %v1455_v63 = vshll.u32 %v1454_v53, 23  ;;  %v1593_v10 = vor.u32 8388608, %v3214_v15  ;;  %v1597_v23 = vsel %vm1596_vm8, %v1595_v47, 0 }
 0x385   : > { %v1566_v58 = vsel %vm1483_vm5, %v1565_v8, %v1564_v16  ;;  %v1731_v5 = vsel %vm1723_vm13, %v1714_v54, %v1730_v14  ;;  %v1733_v49 = vsel %vm1721_vm9, %v1711_v2, %v1714_v54  ;;  %v1728_v42 = vsel %vm1722_vm15, %v1725_v37, %v1727_v28 }
 0x386   : > { %v1569_v32 = vsel %vm3223_vm10, %v3091_v45, %v1566_v58  ;;  %v1456_v60 = vor.u32 4788187, %v1455_v63  ;;  %v1459_v35 = vcvt.s32.f32 %v1452_v40  ;;  %v1732_v29 = vsel %vm1722_vm15, %v1729_v62, %v1731_v5 }
 0x387   : > { %v1734_v13 = vsel %vm1724_vm14, %v1720_v22, 1326507024  ;;  %v3266_v17 = vmul.u32.u64.low %v3210_v11, %v1732_v29  ;;  %v3267_v44 = vmul.u32.u64.high %v3210_v11, %v1732_v29, %v3266_v17  ;;  %v1599_v41 = vand.u32 31, %v1597_v23 }
 0x388   : > { %v1457_v15 = vand.u32 2147483647, %v1456_v60  ;;  %v1735_v47 = vsel %vm1723_vm13, %v1717_v36, %v1734_v13  ;;  %v3270_v9 = vshll.u32 %v1593_v10, 8  ;;  %v3277_v30 = vsel %vm1379_vm12, %v1463_v34, %v3190_v43 }
 0x389   : > { %v1736_v24 = vsel %vm1722_vm15, %v1733_v49, %v1735_v47  ;;  %2374 = vcosq.f32 %v1569_v32  ;;  %v1744_v18 = vmul.u32 %v3210_v11, %v1728_v42  ;;  %v1598_v12 = vshrl.u32 %v1597_v23, 5 }
 0x38a   : > { %v1460_v39 = vmul.f32 %v1459_v35, %v1457_v15  ;;  %v3280_v51 = vmul.u32.u64.low %v3210_v11, %v1736_v24  ;;  %v3281_v50 = vmul.u32.u64.high %v3210_v11, %v1736_v24, %v3280_v51  ;;  %2376 = vsinq.f32 %v1569_v32 }
 0x38b   : > { %v1600_v52 = vsub.s32 32, %v1599_v41  ;;  %v1747_v43 = vadd.s32 1, %v3267_v44  ;;  %v1602_v34 = vshll.u32 %v2431_v55, %v1599_v41  ;;  %v1605_v54 = vshll.u32 %v2432_v57, %v1599_v41 }
 0x38c   : > { %v1461_v2 = vxor.u32 2147483648, %v1460_v39  ;;  %v1608_v7 = vshll.u32 %v2433_v61, %v1599_v41  ;;  %vm1746_vm1 = vc.u32 %v3281_v50, %v3266_v17  ;;  %v1611_v11 = vshll.u32 %v2434_v0, %v1599_v41 }
 0x38d   : > { %v1603_v16 = vshrl.u32 %v2432_v57, %v1600_v52  ;;  %v1606_v1 = vshrl.u32 %v2433_v61, %v1600_v52  ;;  %v1609_v27 = vshrl.u32 %v2434_v0, %v1600_v52  ;;  %v1612_v38 = vshrl.u32 %v2435_v3, %v1600_v52 }
 0x38e   : > { %v1614_v19 = vshll.u32 %v2435_v3, %v1599_v41  ;;  %v1748_v36 = vsel %vm1746_vm1, %v1747_v43, %v3267_v44  ;;  %v1462_v21 = vsel %vm1379_vm12, %v1461_v2, %v1460_v39  ;;  %v1615_v22 = vshrl.u32 %v2436_v6, %v1600_v52 }
 0x38f   : > { %v1604_v56 = vor.u32 %v1603_v16, %v1602_v34  ;;  %v1607_v8 = vor.u32 %v1606_v1, %v1605_v54  ;;  %v1610_v57 = vor.u32 %v1609_v27, %v1608_v7  ;;  %v1749_v61 = vadd.s32 %v1748_v36, %v1744_v18 }
 0x390   : > { %v1613_v53 = vor.u32 %v1612_v38, %v1611_v11  ;;  %v1601_v37 = vshrl.u32 %v2431_v55, %v1600_v52  ;;  %vm1617_vm2 = vcmp.lt.s32.totalorder %v1598_v12, 1  ;;  %vm1618_vm3 = vcmp.lt.s32.totalorder %v1598_v12, 2 }
 0x391   : > { %vm1620_vm4 = vcmp.lt.s32.totalorder %v1598_v12, 4  ;;  %v1750_v0 = vadd.s32 536870912, %v1749_v61  ;;  %v1616_v33 = vor.u32 %v1615_v22, %v1614_v19  ;;  %v1625_v62 = vsel %vm1617_vm2, %v1604_v56, %v1607_v8 }
 0x392   : > { %v1622_v3 = vsel %vm1620_vm4, %v1610_v57, 2102212464  ;;  %vm1619_vm5 = vcmp.lt.s32.totalorder %v1598_v12, 3  ;;  %v1626_v58 = vsel %vm1620_vm4, %v1613_v53, 920167782  ;;  %v1629_v40 = vsel %vm1617_vm2, %v1607_v8, %v1610_v57 }
 0x393   : > { %v1465_v63 = vsel %vm3285_vm0, %v3096_v59, %v1462_v21  ;;  %v3310_v28 = vshrl.u32 %v1750_v0, 30  ;;  %v1621_v14 = vsel %vm1617_vm2, %v1601_v37, %v1604_v56  ;;  %v1627_v6 = vsel %vm1619_vm5, %v1610_v57, %v1626_v58 }
 0x394   : > { %v1630_v10 = vsel %vm1620_vm4, %v1616_v33, 1326507024  ;;  %v1623_v55 = vsel %vm1619_vm5, %v1607_v8, %v1622_v3  ;;  %v1628_v23 = vsel %vm1618_vm3, %v1625_v62, %v1627_v6  ;;  %2378 = vcosq.f32 %v1465_v63 }
 0x395   : > { %v1631_v32 = vsel %vm1619_vm5, %v1613_v53, %v1630_v10  ;;  %v1752_v60 = vshll.u32 %v3310_v28, 30  ;;  %v3316_v49 = vmul.u32.u64.low %v3270_v9, %v1628_v23  ;;  %v3317_v35 = vmul.u32.u64.high %v3270_v9, %v1628_v23, %v3316_v49 }
 0x396   : > { %v1632_v5 = vsel %vm1618_vm3, %v1629_v40, %v1631_v32  ;;  %v2375_v42 = vpop.eup %2374  ;;  %2380 = vsinq.f32 %v1465_v63  ;;  %v1570_v15 = vsel %vm3223_vm10, 0, %v3205_v4  ;;  %v1624_v24 = vsel %vm1618_vm3, %v1621_v14, %v1623_v55 }
 0x397   : > { %v3321_v29 = vmul.u32.u64.low %v3270_v9, %v1632_v5  ;;  %v3322_v13 = vmul.u32.u64.high %v3270_v9, %v1632_v5, %v3321_v29  ;;  %v2377_v47 = vpop.eup %2376  ;;  %v1753_v44 = vsub.s32 %v1749_v61, %v1752_v60  ;;  %v1466_v41 = vsel %vm3285_vm0, 0, %v3277_v30 }
 0x398   : > { %v1643_v51 = vadd.s32 1, %v3317_v35  ;;  %v1574_v18 = vadd.s32 3, %v1570_v15  ;;  %v1640_v52 = vmul.u32 %v3270_v9, %v1624_v24  ;;  %v1470_v2 = vadd.s32 3, %v1466_v41 }
 0x399   : > { %v1755_v39 = vsub.s32 0, %v1753_v44  ;;  %vm1642_vm6 = vc.u32 %v3322_v13, %v3316_v49  ;;  %v1578_v30 = vxor.u32 2147483648, %v2377_v47  ;;  %v1581_v1 = vxor.u32 2147483648, %v2375_v42 }
 0x39a   : > { %v1644_v4 = vsel %vm1642_vm6, %v1643_v51, %v3317_v35  ;;  %v1575_v34 = vand.u32 3, %v1574_v18  ;;  %v1471_v16 = vand.u32 3, %v1470_v2  ;;  %v1745_v9 = vadd.s32 %v3266_v17, %v3281_v50 }
 0x39b   : > { %v2041_v31 = vmin.u32 %v1755_v39, %v1753_v44  ;;  %v1645_v43 = vadd.s32 %v1644_v4, %v1640_v52  ;;  %vm1469_vm14 = vweird.f32 %v3096_v59  ;;  %vm1573_vm15 = vweird.f32 %v3091_v45 }
 0x39c   : > { %vm1577_vm8 = vcmp.eq.s32.totalorder %v1575_v34, 0  ;;  %vm1580_vm9 = vcmp.eq.s32.totalorder %v1575_v34, 2  ;;  %vm1476_vm10 = vcmp.eq.s32.totalorder %v1471_v16, 2  ;;  %vm1576_vm11 = vcmp.lt.s32.totalorder %v1575_v34, 2 }
 0x39d   : > { %v1757_v12 = vclz %v2041_v31  ;;  %v1646_v54 = vadd.s32 536870912, %v1645_v43  ;;  %v1579_v57 = vsel %vm1577_vm8, %v2375_v42, %v1578_v30  ;;  %v1582_v21 = vsel %vm1580_vm9, %v1581_v1, %v2377_v47 }
 0x39e   : > { %vm1473_vm12 = vcmp.eq.s32.totalorder %v1471_v16, 0  ;;  %vm1472_vm13 = vcmp.lt.s32.totalorder %v1471_v16, 2  ;;  %v1583_v3 = vsel %vm1576_vm11, %v1579_v57, %v1582_v21  ;;  %v1641_v59 = vadd.s32 %v3316_v49, %v3322_v13 }
 0x39f   : > { %v2042_v25 = vadd.s32 4294967294, %v1757_v12  ;;  %v3336_v7 = vshrl.u32 %v1646_v54, 30  ;;  %v1584_v10 = vsel %vm1573_vm15, nan, %v1583_v3  ;;  %vm1691_vm1 = vcmp.lt.s32.totalorder %v3181_v46, 0 }
 0x3a0   : > { %vm3350_vm2 = vcmp.le.f32.partialorder %v1689_v20, 0.7853982  ;;  %v1775_v31 = vsub.s32 4, %v3310_v28  ;;  %vm1587_vm3 = vcmp.lt.s32.totalorder %v3187_v26, 0  ;;  %vm1586_vm4 = vcmp.le.f32.partialorder %v1585_v48, 0.7853982 }
 0x3a1   : > { %v2379_v27 = vpop.eup %2378  ;;  %vm2043_vm7 = vcmp.lt.s32.totalorder %v2042_v25, 0  ;;  %v1648_v38 = vshll.u32 %v3336_v7, 30  ;;  %v1671_v20 = vsub.s32 4, %v3336_v7  ;;  %vm1677_vm11 = vweird.f32 %v3187_v26 }
 0x3a2   : > { %v1760_v11 = vsel %vm2043_vm7, 0, %v2042_v25  ;;  %v1477_v19 = vxor.u32 2147483648, %v2379_v27  ;;  %v1776_v34 = vsel %vm1691_vm1, %v1775_v31, %v3310_v28 }
 0x3a3   : > { %v2381_v36 = vpop.eup %2380  ;;  %v1761_v56 = vsub.s32 32, %v1760_v11  ;;  %v1765_v8 = vsub.s32 4294967266, %v1760_v11  ;;  %v1649_v61 = vsub.s32 %v1645_v43, %v1648_v38  ;;  %v1762_v37 = vshll.u32 %v1753_v44, %v1760_v11 }
 0x3a4   : > { %v1474_v53 = vxor.u32 2147483648, %v2381_v36  ;;  %v1478_v22 = vsel %vm1476_vm10, %v1477_v19, %v2381_v36  ;;  %v1672_v54 = vsel %vm1587_vm3, %v1671_v20, %v3336_v7  ;;  %v1778_v16 = vsel %vm3350_vm2, 0, %v1776_v34 }
 0x3a5   : > { %v1763_v0 = vshrl.u32 %v1745_v9, %v1761_v56  ;;  %v1766_v17 = vadd.s32 127, %v1765_v8  ;;  %v1651_v50 = vsub.s32 0, %v1649_v61  ;;  %v1674_v25 = vsel %vm1586_vm4, 0, %v1672_v54 }
 0x3a6   : > { %v1475_v33 = vsel %vm1473_vm12, %v2379_v27, %v1474_v53  ;;  %v1782_v30 = vadd.s32 3, %v1778_v16  ;;  %v1678_v9 = vadd.s32 3, %v1674_v25  ;;  %vm1781_vm12 = vweird.f32 %v3181_v46 }
 0x3a7   : > { %v1764_v62 = vor.u32 %v1763_v0, %v1762_v37  ;;  %v1767_v58 = vshll.u32 %v1766_v17, 23  ;;  %v1479_v40 = vsel %vm1472_vm13, %v1475_v33, %v1478_v22  ;;  %v2037_v63 = vmin.u32 %v1651_v50, %v1649_v61  ;;  %v2045_v50 = vld [vmem:[%s3385_s3 + $0x3] ss:$0 sm:$0xff] }
 0x3a8   : > { %v1480_v14 = vsel %vm1469_vm14, nan, %v1479_v40  ;;  %v1783_v11 = vand.u32 3, %v1782_v30  ;;  %v1679_v19 = vand.u32 3, %v1678_v9  ;;  %vm1903_vm13 = vcmask 97280  }
 0x3a9   : > { %v1768_v6 = vor.u32 4788187, %v1767_v58  ;;  %2229 = vmatprep.mubr.f32.mxu0 %v1480_v14  ;;  %v1653_v55 = vclz %v2037_v63  ;;  %v1771_v32 = vcvt.s32.f32 %v1764_v62 }
 0x3aa   : > { %2230 = vmatmul.mubr.f32.vlgmr.msra.gmra.mxu0 %v1584_v10  ;;  %vm1785_vm5 = vcmp.eq.s32.totalorder %v1783_v11, 0  ;;  %vm1788_vm6 = vcmp.eq.s32.totalorder %v1783_v11, 2  ;;  %vm1684_vm7 = vcmp.eq.s32.totalorder %v1679_v19, 2  ;;  %vm1681_vm8 = vcmp.eq.s32.totalorder %v1679_v19, 0 }
 0x3ab   : > { %v1769_v23 = vand.u32 2147483647, %v1768_v6  ;;  %v2038_v60 = vadd.s32 4294967294, %v1653_v55  ;;  %vm1784_vm9 = vcmp.lt.s32.totalorder %v1783_v11, 2  ;;  %vm1680_vm10 = vcmp.lt.s32.totalorder %v1679_v19, 2 }
 0x3ad   : > { %v1772_v5 = vmul.f32 %v1771_v32, %v1769_v23  ;;  %vm2039_vm0 = vcmp.lt.s32.totalorder %v2038_v60, 0 }
 0x3ae   : > { %v1656_v42 = vsel %vm2039_vm0, 0, %v2038_v60 }
 0x3af   : > { %v1773_v35 = vxor.u32 2147483648, %v1772_v5  ;;  %v1657_v29 = vsub.s32 32, %v1656_v42  ;;  %v1661_v15 = vsub.s32 4294967266, %v1656_v42  ;;  %v1658_v45 = vshll.u32 %v1649_v61, %v1656_v42 }
 0x3b1   : > { %v1659_v47 = vshrl.u32 %v1641_v59, %v1657_v29  ;;  %v1662_v44 = vadd.s32 127, %v1661_v15  ;;  %v1774_v24 = vsel %vm1691_vm1, %v1773_v35, %v1772_v5 }
 0x3b2   : > { %v1777_v49 = vsel %vm3350_vm2, %v3181_v46, %v1774_v24 }
 0x3b3   : > { %v1660_v41 = vor.u32 %v1659_v47, %v1658_v45  ;;  %v1663_v39 = vshll.u32 %v1662_v44, 23  ;;  %2382 = vcosq.f32 %v1777_v49 }
 0x3b4   : > { %2384 = vsinq.f32 %v1777_v49 }
 0x3b5   : > { %v1664_v13 = vor.u32 4788187, %v1663_v39  ;;  %v1667_v52 = vcvt.s32.f32 %v1660_v41 }
 0x3b7   : > { %v1665_v18 = vand.u32 2147483647, %v1664_v13 }
 0x3b9   : > { %v1668_v2 = vmul.f32 %v1667_v52, %v1665_v18 }
 0x3bb   : > { %v1669_v4 = vxor.u32 2147483648, %v1668_v2 }
 0x3bd   : > { %v1670_v43 = vsel %vm1587_vm3, %v1669_v4, %v1668_v2 }
 0x3be   : > { %v1673_v12 = vsel %vm1586_vm4, %v3187_v26, %v1670_v43 }
 0x3bf   : > { %2386 = vcosq.f32 %v1673_v12 }
 0x3c0   : > { %2388 = vsinq.f32 %v1673_v12  ;;  %v2383_v1 = vpop.eup %2382 }
 0x3c1   : > { %v2385_v27 = vpop.eup %2384  ;;  %v1789_v38 = vxor.u32 2147483648, %v2383_v1 }
 0x3c2   : > { %v1786_v48 = vxor.u32 2147483648, %v2385_v27 }
 0x3c3   : > { %v1790_v7 = vsel %vm1788_vm6, %v1789_v38, %v2385_v27 }
 0x3c4   : > { %v1787_v8 = vsel %vm1785_vm5, %v2383_v1, %v1786_v48 }
 0x3c5   : > { %v1791_v53 = vsel %vm1784_vm9, %v1787_v8, %v1790_v7 }
 0x3c6   : > { %v1792_v0 = vsel %vm1781_vm12, nan, %v1791_v53 }
 0x3cc   : > { %v2387_v36 = vpop.eup %2386 }
 0x3cd   : > { %v2389_v28 = vpop.eup %2388  ;;  %v1685_v56 = vxor.u32 2147483648, %v2387_v36 }
 0x3ce   : > { %v1682_v57 = vxor.u32 2147483648, %v2389_v28 }
 0x3cf   : > { %v1686_v21 = vsel %vm1684_vm7, %v1685_v56, %v2389_v28 }
 0x3d0   : > { %v1683_v61 = vsel %vm1681_vm8, %v2387_v36, %v1682_v57 }
 0x3d1   : > { %v1687_v22 = vsel %vm1680_vm10, %v1683_v61, %v1686_v21 }
 0x3d2   : > { %v1688_v37 = vsel %vm1677_vm11, nan, %v1687_v22 }
 0x3d3   : > { %2232 = vmatprep.mubr.f32.mxu1 %v1688_v37 }
 0x3d4   : > { %2233 = vmatmul.mubr.f32.vlgmr.msra.gmra.mxu1 %v1792_v0 }
 0x46a   : > { %v2231_v17 = vpop.f32.mrf.mxu0 }
 0x46b   : > { %v1890_v3 = vadd.f32 %v2231_v17, %v2045_v50 }
 0x46c   : > { %v1884_v33 = vpop.f32.mrf.mxu0 }
 0x46d   : > { %v1885_v26 = vadd.f32 %v2045_v50, %v1884_v33  ;;  %1905 = vst.msk [vmem:[%s214_s18 + $0x8] sm:$0xff] %vm1903_vm13, %v1890_v3 }
 0x46f   : > { %1904 = vst.msk [vmem:[%s214_s18] sm:$0xff] %vm1903_vm13, %v1885_v26 }
 0x494   : > { %v2234_v46 = vpop.f32.mrf.mxu1 }
 0x495   : > { %v1900_v40 = vadd.f32 %v2234_v46, %v2045_v50 }
 0x496   : > { %v1894_v62 = vpop.f32.mrf.mxu1 }
 0x497   : > { %v1895_v58 = vadd.f32 %v2045_v50, %v1894_v62  ;;  %1907 = vst.msk [vmem:[%s214_s18 + $0x18] sm:$0xff] %vm1903_vm13, %v1900_v40 }
 0x499   : > { %1906 = vst.msk [vmem:[%s214_s18 + $0x10] sm:$0xff] %vm1903_vm13, %v1895_v58 }
 0x49a PF: > { %s15_s15 = sadd.s32 1, %s2426_s15  }
 0x49b   : > { %p12_p1 = scmp.ge.s32.totalorder %s15_s15, 4  }
 0x49d   :  { %14 = sbr.rel (!%p12_p1) target bundleno = 1 (0x1), region = 76 }
 0x4a2   :  { %1930 = vsyncpa [#allocation3], 1 }
 0x4a3   :  { %1932 = vsyncpa [#allocation3 + $0x1], 1 }

</bundles_post_ra>
